<compile_context>
chip_gen: v5e
topology: v5e:2x2
jax: 0.10.0
libtpu: 0.0.40
codegen_flags: <defaults>
</compile_context>

<pallas_src>
import math

import numpy as np

import jax
import jax.numpy as jnp
from jax.experimental import pallas as pl
from jax.experimental.pallas import tpu as pltpu


# -----------------------------------------------------------------------------
# Trace-time planning: static length schedule + one packed constant slab.
# -----------------------------------------------------------------------------
def _build_plan(params, C_in, L):
    mats = []

    def add(m):
        mats.append(m)
        return len(mats) - 1

    flops = 0

    # ---- down path schedule: Conv1d(k=4, s=2, p=1) ----
    downs = []
    ch, cur = C_in, L
    for (w, b) in params["downs"]:                  # torch weight [O, C, 4]
        O, C, K = map(int, w.shape)
        assert C == ch and K == 4
        L_in = cur
        L_out = (L_in + 2 - K) // 2 + 1
        assert L_out >= 1
        J = 2 * L_out - 1                           # stride-1 positions we need
        wp = jnp.transpose(w, (2, 1, 0)).reshape(K * C, O)   # row (k, c) <-> lane k*C+c
        # stride-2 row select, emitted already zero-row-padded for the next layer
        D = np.zeros((L_out + 2, J), np.float32)
        D[1 + np.arange(L_out), 2 * np.arange(L_out)] = 1.0
        downs.append(dict(C=C, O=O, L_in=L_in, L_out=L_out, J=J,
                          w=add(wp), b=add(b.reshape(1, O)), d=add(D)))
        flops += 2 * J * K * C * O + 2 * (L_out + 2) * J * O
        ch, cur = O, L_out

    # ---- bottleneck: Conv1d(k=3, s=1, p=1) ----
    w, b = params["bottleneck"]                     # [C, C, 3]
    O, C, K = map(int, w.shape)
    assert C == ch and O == ch and K == 3
    Lb = cur
    wp = jnp.transpose(w, (2, 1, 0)).reshape(K * C, O)
    Dp = np.zeros((Lb + 2, Lb), np.float32)         # identity select + zero re-pad
    Dp[1 + np.arange(Lb), np.arange(Lb)] = 1.0
    bott = dict(C=C, Lb=Lb, w=add(wp), b=add(b.reshape(1, O)), d=add(Dp))
    flops += 2 * Lb * K * C * O + 2 * (Lb + 2) * Lb * O

    # ---- up path static schedule (skip lengths, fixups) ----
    skip_cl = [(d["O"], d["L_out"]) for d in downs]
    x_ch, x_len = ch, cur
    sched = []
    for (w, b), (s_ch, s_len) in zip(params["ups"], reversed(skip_cl)):
        in_c, out_c, K = map(int, w.shape)
        assert in_c == x_ch + s_ch and out_c == s_ch and K == 4
        assert x_len <= s_len                       # PyTorch only right-pads, never crops
        sched.append((x_ch, s_ch, s_len, out_c))
        x_ch, x_len = out_c, 2 * s_len
    L_final = x_len

    # ---- up path: ConvTranspose1d(k=4, s=2, p=1) on cat([x, skip], ch) ----
    ups = []
    for j, ((w, b), (Cx, Cs, Ls, O)) in enumerate(zip(params["ups"], sched)):
        rows_next = (sched[j + 1][2] + 2) if j + 1 < len(sched) else (L_final + 2)
        # parity-packed weights:
        #   out[2m]   = xs[m] @ W1 + xs[m-1] @ W3
        #   out[2m+1] = xs[m] @ W2 + xs[m+1] @ W0
        we = jnp.concatenate([w[:, :, 1], w[:, :, 3]], axis=0)   # [2*(Cx+Cs), O]
        wo = jnp.concatenate([w[:, :, 2], w[:, :, 0]], axis=0)
        # interleave + zero re-pad (+ length fixup for the next layer) constants
        Pe = np.zeros((rows_next, Ls), np.float32)
        Po = np.zeros((rows_next, Ls), np.float32)
        Pe[1 + 2 * np.arange(Ls), np.arange(Ls)] = 1.0           # out[2m]   <- even[m]
        Po[2 + 2 * np.arange(Ls), np.arange(Ls)] = 1.0           # out[2m+1] <- odd[m]
        ups.append(dict(Cx=Cx, Cs=Cs, Ls=Ls, O=O,
                        we=add(we), wo=add(wo), b=add(b.reshape(1, O)),
                        pe=add(Pe), po=add(Po)))
        flops += 2 * (2 * Ls) * (2 * (Cx + Cs)) * O + 2 * 2 * rows_next * Ls * O

    # ---- final 1x1 conv ----
    w, b = params["final"]                          # [out_ch, C, 1]
    out_ch, C, K = map(int, w.shape)
    assert C == x_ch and K == 1
    final = dict(C=C, O=out_ch, Lf=L_final,
                 w=add(jnp.transpose(w.reshape(out_ch, C))),
                 b=add(b.reshape(1, out_ch)))
    flops += 2 * L_final * C * out_ch

    # ---- pack everything into ONE [R, width] f32 slab (8-row aligned blocks) ----
    width = max(int(m.shape[1]) for m in mats)
    blocks, slices, off = [], [], 0
    for m in mats:
        m = jnp.asarray(m, jnp.float32)
        r, c = int(m.shape[0]), int(m.shape[1])
        rp = -(-r // 8) * 8
        blocks.append(jnp.pad(m, ((0, rp - r), (0, width - c))))
        slices.append((off, r, c))
        off += rp
    slab = jnp.concatenate(blocks, axis=0)

    plan = dict(downs=downs, bott=bott, ups=ups, final=final,
                slices=slices, L_final=L_final, out_ch=out_ch)
    return plan, slab, flops


# -----------------------------------------------------------------------------
# The fused UNet1D kernel (one batch element per grid step)
# -----------------------------------------------------------------------------
def _make_kernel(plan):
    slices = plan["slices"]

    def kernel(x_ref, slab_ref, o_ref):
        f32 = jnp.float32

        def rd(i):                                  # static slice of the constant slab
            off, r, c = slices[i]
            return slab_ref[off:off + r, 0:c]

        def dot(a, b):
            return jnp.dot(a, b, preferred_element_type=f32)

        # Incoming activation is channels-last and already zero-row padded:
        # rows 0 and L+1 are zero, data lives in rows 1..L.
        xp = x_ref[0].astype(f32)                   # [L+2, C_in]

        # ---------- down path: Conv1d(k=4, s=2, p=1) ----------
        skips = []
        for d in plan["downs"]:
            J = d["J"]
            # tap-packed im2col: lane-concat of 4 contiguous row windows
            xcat = jnp.concatenate([xp[k:k + J] for k in range(4)], axis=1)   # [J, 4C]
            y = dot(xcat, rd(d["w"])) + rd(d["b"])                            # [J, O]
            # stride-2 select + zero re-pad via one precomputed 0/1 constant
            xp = dot(rd(d["d"]), y)                                           # [L_out+2, O]
            skips.append(xp)

        # ---------- bottleneck: Conv1d(k=3, s=1, p=1) ----------
        bt = plan["bott"]
        Lb = bt["Lb"]
        xcat = jnp.concatenate([xp[k:k + Lb] for k in range(3)], axis=1)      # [Lb, 3C]
        y = dot(xcat, rd(bt["w"])) + rd(bt["b"])
        xp = dot(rd(bt["d"]), y)                                              # [Lb+2, C]

        # ---------- up path: ConvTranspose1d(k=4, s=2, p=1) on cat([x, skip]) ----------
        for u in plan["ups"]:
            sp = skips.pop()                        # zero-row-padded skip, [Ls+2, Cs]
            Ls = u["Ls"]
            # parity decomposition (xs = cat([x, skip], channels)):
            #   even[m] = xs[m] @ W1 + xs[m-1] @ W3
            #   odd[m]  = xs[m] @ W2 + xs[m+1] @ W0
            even_in = jnp.concatenate(
                [xp[1:Ls + 1], sp[1:Ls + 1], xp[0:Ls], sp[0:Ls]], axis=1)
            odd_in = jnp.concatenate(
                [xp[1:Ls + 1], sp[1:Ls + 1], xp[2:Ls + 2], sp[2:Ls + 2]], axis=1)
            even = dot(even_in, rd(u["we"])) + rd(u["b"])                     # [Ls, O]
            odd = dot(odd_in, rd(u["wo"])) + rd(u["b"])                       # [Ls, O]
            # interleave parities, re-pad, and apply the static length fixup,
            # all with two precomputed 0/1 scatters (bias was added above, so
            # padded rows stay exactly zero).
            xp = dot(rd(u["pe"]), even) + dot(rd(u["po"]), odd)

        # ---------- final 1x1 conv ----------
        fn = plan["final"]
        out = dot(xp[1:fn["Lf"] + 1], rd(fn["w"])) + rd(fn["b"])              # [Lf, out_ch]
        o_ref[0] = out.astype(o_ref.dtype)

    return kernel


def unet1d_forward(params, x):
    """x: [B, C_in, L] (PyTorch NCL) -> [B, out_ch, L_final] (NCL)."""
    B, C_in, L = x.shape
    plan, slab, flops = _build_plan(params, C_in, L)
    L_final, out_ch = plan["L_final"], plan["out_ch"]

    # channels-last + the first layer's zero-row padding, done once outside the kernel
    x_cl = jnp.pad(jnp.transpose(x, (0, 2, 1)).astype(jnp.float32),
                   ((0, 0), (1, 1), (0, 0)))            # [B, L+2, C_in]

    bytes_accessed = 4 * (int(x_cl.size) + int(slab.size) + B * L_final * out_ch)

    out_cl = pl.pallas_call(
        _make_kernel(plan),
        out_shape=jax.ShapeDtypeStruct((B, L_final, out_ch), jnp.float32),
        grid=(B,),
        in_specs=[
            pl.BlockSpec((1, L + 2, C_in), lambda b: (b, 0, 0)),
            pl.BlockSpec(slab.shape, lambda b: (0, 0)),   # grid-invariant constant slab
        ],
        out_specs=pl.BlockSpec((1, L_final, out_ch), lambda b: (b, 0, 0)),
        compiler_params=pltpu.CompilerParams(
            dimension_semantics=("parallel",),            # megacore-shard batch on v7x
            vmem_limit_bytes=32 * 1024 * 1024,
        ),
        cost_estimate=pl.CostEstimate(flops=int(B * flops), transcendentals=0,
                                      bytes_accessed=int(bytes_accessed)),
    )(x_cl, slab)

    # TODO(synk): for production sizes (L >= 128) emit a lane-dense [B, out_ch, L]
    # store straight from the kernel and drop this transpose.
    return jnp.transpose(out_cl, (0, 2, 1))


# -----------------------------------------------------------------------------
# UNet1D parameters (mirrors the PyTorch module exactly)
# -----------------------------------------------------------------------------
def init_unet1d(key, in_ch, base_ch, out_ch, num_layers=4):
    def uinit(k, shape, fan_in):
        bound = 1.0 / math.sqrt(fan_in)
        return jax.random.uniform(k, shape, jnp.float32, -bound, bound)

    n_convs = 2 * num_layers + 2
    keys = iter(jax.random.split(key, 2 * n_convs))

    params = {"downs": [], "ups": []}
    down_channels = []
    ch = in_ch
    for i in range(num_layers):
        outc = base_ch * (2 ** i)
        fan = ch * 4
        params["downs"].append(
            (uinit(next(keys), (outc, ch, 4), fan), uinit(next(keys), (outc,), fan)))
        down_channels.append(outc)
        ch = outc

    fan = ch * 3
    params["bottleneck"] = (uinit(next(keys), (ch, ch, 3), fan),
                            uinit(next(keys), (ch,), fan))

    for skip_c in reversed(down_channels):
        in_c = ch + skip_c
        out_c = skip_c
        fan = out_c * 4
        params["ups"].append(
            (uinit(next(keys), (in_c, out_c, 4), fan), uinit(next(keys), (out_c,), fan)))
        ch = out_c

    fan = ch * 1
    params["final"] = (uinit(next(keys), (out_ch, ch, 1), fan),
                       uinit(next(keys), (out_ch,), fan))
    return params


# -----------------------------------------------------------------------------
# Pure-JAX reference (lax convs) for the correctness check
# -----------------------------------------------------------------------------
def ref_forward(params, x):
    def conv(x, w, b, stride, padding):
        out = jax.lax.conv_general_dilated(
            x, w, window_strides=(stride,), padding=[(padding, padding)],
            dimension_numbers=("NCH", "OIH", "NCH"))
        return out + b[None, :, None]

    def convT(x, w, b, stride, padding):
        K = w.shape[2]
        w_t = jnp.flip(jnp.transpose(w, (1, 0, 2)), axis=2)
        out = jax.lax.conv_general_dilated(
            x, w_t, window_strides=(1,),
            padding=[(K - 1 - padding, K - 1 - padding)],
            lhs_dilation=(stride,),
            dimension_numbers=("NCH", "OIH", "NCH"))
        return out + b[None, :, None]

    skips = []
    for (w, b) in params["downs"]:
        x = conv(x, w, b, 2, 1)
        skips.append(x)
    w, b = params["bottleneck"]
    x = conv(x, w, b, 1, 1)
    for (w, b) in params["ups"]:
        skip = skips.pop()
        if x.shape[2] != skip.shape[2]:
            x = jnp.pad(x, ((0, 0), (0, 0), (0, skip.shape[2] - x.shape[2])))
        x = jnp.concatenate([x, skip], axis=1)
        x = convT(x, w, b, 2, 1)
    w, b = params["final"]
    return conv(x, w, b, 1, 0)


if __name__ == "__main__":
    B, IN_CH, BASE_CH, OUT_CH, L = 2, 4, 8, 4, 16

    key = jax.random.PRNGKey(0)
    k_params, k_x = jax.random.split(key)
    params = init_unet1d(k_params, IN_CH, BASE_CH, OUT_CH, num_layers=4)
    x = jax.random.normal(k_x, (B, IN_CH, L), jnp.float32)

    fwd = jax.jit(unet1d_forward)
    out = jax.block_until_ready(fwd(params, x))
    assert out.shape == (B, OUT_CH, L), out.shape

    ref = jax.block_until_ready(ref_forward(params, x))
    err = float(jnp.max(jnp.abs(out - ref)))
    assert err < 1e-3, f"mismatch vs lax reference: {err}"

    print("KERNEL_OK")
</pallas_src>

<mosaic_0001>
module attributes {stable_mosaic.version = 11 : i64} {
  func.func @kernel(%arg0: i32, %arg1: memref<1x18x4xf32, #tpu.memory_space<vmem>>, %arg2: memref<1864x64xf32, #tpu.memory_space<vmem>>, %arg3: memref<1x16x4xf32, #tpu.memory_space<vmem>>) attributes {dimension_semantics = [#tpu.dimension_semantics<parallel>], iteration_bounds = array<i64: 2>, scalar_prefetch = 0 : i64, scratch_operands = 0 : i64, tpu.core_type = #tpu.core_type<tc>, window_params = [{transform_indices = @transform_0, window_bounds = array<i64: 1, 18, 4>}, {pipeline_mode = #tpu.pipeline_mode<synchronous>, transform_indices = @transform_1, window_bounds = array<i64: 1864, 64>}, {transform_indices = @transform_2, window_bounds = array<i64: 1, 16, 4>}]} {
    %c0 = arith.constant 0 : index
    %c0_0 = arith.constant 0 : index
    %c0_1 = arith.constant 0 : index
    %0 = vector.load %arg1[%c0, %c0_0, %c0_1] : memref<1x18x4xf32, #tpu.memory_space<vmem>>, vector<1x18x4xf32>
    %1 = vector.shape_cast %0 : vector<1x18x4xf32> to vector<18x4xf32>
    %2 = vector.extract_strided_slice %1 {offsets = [0, 0], sizes = [15, 4], strides = [1, 1]} : vector<18x4xf32> to vector<15x4xf32>
    %3 = vector.extract_strided_slice %1 {offsets = [1, 0], sizes = [15, 4], strides = [1, 1]} : vector<18x4xf32> to vector<15x4xf32>
    %4 = vector.extract_strided_slice %1 {offsets = [2, 0], sizes = [15, 4], strides = [1, 1]} : vector<18x4xf32> to vector<15x4xf32>
    %5 = vector.extract_strided_slice %1 {offsets = [3, 0], sizes = [15, 4], strides = [1, 1]} : vector<18x4xf32> to vector<15x4xf32>
    %6 = tpu.concatenate %2, %3, %4, %5 in 1 : vector<15x4xf32>, vector<15x4xf32>, vector<15x4xf32>, vector<15x4xf32> -> vector<15x16xf32>
    %c0_2 = arith.constant 0 : index
    %c0_3 = arith.constant 0 : index
    %7 = vector.load %arg2[%c0_2, %c0_3] : memref<1864x64xf32, #tpu.memory_space<vmem>>, vector<16x8xf32>
    %cst = arith.constant dense<0.000000e+00> : vector<15x8xf32>
    %8 = tpu.matmul %6, %7, %cst {dimension_numbers = #tpu.dot_dimension_numbers<[1], [0], [0], [1], [0, 0, 1, 1], [], []>} : vector<15x16xf32>, vector<16x8xf32>, vector<15x8xf32> -> vector<15x8xf32>
    %c16 = arith.constant 16 : index
    %c0_4 = arith.constant 0 : index
    %9 = vector.load %arg2[%c16, %c0_4] : memref<1864x64xf32, #tpu.memory_space<vmem>>, vector<1x8xf32>
    %10 = vector.broadcast %9 : vector<1x8xf32> to vector<15x8xf32>
    %11 = arith.addf %8, %10 : vector<15x8xf32>
    %c24 = arith.constant 24 : index
    %c0_5 = arith.constant 0 : index
    %12 = vector.load %arg2[%c24, %c0_5] : memref<1864x64xf32, #tpu.memory_space<vmem>>, vector<10x15xf32>
    %cst_6 = arith.constant dense<0.000000e+00> : vector<10x8xf32>
    %13 = tpu.matmul %12, %11, %cst_6 {dimension_numbers = #tpu.dot_dimension_numbers<[1], [0], [0], [1], [0, 0, 1, 1], [], []>} : vector<10x15xf32>, vector<15x8xf32>, vector<10x8xf32> -> vector<10x8xf32>
    %14 = vector.extract_strided_slice %13 {offsets = [0, 0], sizes = [7, 8], strides = [1, 1]} : vector<10x8xf32> to vector<7x8xf32>
    %15 = vector.extract_strided_slice %13 {offsets = [1, 0], sizes = [7, 8], strides = [1, 1]} : vector<10x8xf32> to vector<7x8xf32>
    %16 = vector.extract_strided_slice %13 {offsets = [2, 0], sizes = [7, 8], strides = [1, 1]} : vector<10x8xf32> to vector<7x8xf32>
    %17 = vector.extract_strided_slice %13 {offsets = [3, 0], sizes = [7, 8], strides = [1, 1]} : vector<10x8xf32> to vector<7x8xf32>
    %18 = tpu.concatenate %14, %15, %16, %17 in 1 : vector<7x8xf32>, vector<7x8xf32>, vector<7x8xf32>, vector<7x8xf32> -> vector<7x32xf32>
    %c40 = arith.constant 40 : index
    %c0_7 = arith.constant 0 : index
    %19 = vector.load %arg2[%c40, %c0_7] : memref<1864x64xf32, #tpu.memory_space<vmem>>, vector<32x16xf32>
    %cst_8 = arith.constant dense<0.000000e+00> : vector<7x16xf32>
    %20 = tpu.matmul %18, %19, %cst_8 {dimension_numbers = #tpu.dot_dimension_numbers<[1], [0], [0], [1], [0, 0, 1, 1], [], []>} : vector<7x32xf32>, vector<32x16xf32>, vector<7x16xf32> -> vector<7x16xf32>
    %c72 = arith.constant 72 : index
    %c0_9 = arith.constant 0 : index
    %21 = vector.load %arg2[%c72, %c0_9] : memref<1864x64xf32, #tpu.memory_space<vmem>>, vector<1x16xf32>
    %22 = vector.broadcast %21 : vector<1x16xf32> to vector<7x16xf32>
    %23 = arith.addf %20, %22 : vector<7x16xf32>
    %c80 = arith.constant 80 : index
    %c0_10 = arith.constant 0 : index
    %24 = vector.load %arg2[%c80, %c0_10] : memref<1864x64xf32, #tpu.memory_space<vmem>>, vector<6x7xf32>
    %cst_11 = arith.constant dense<0.000000e+00> : vector<6x16xf32>
    %25 = tpu.matmul %24, %23, %cst_11 {dimension_numbers = #tpu.dot_dimension_numbers<[1], [0], [0], [1], [0, 0, 1, 1], [], []>} : vector<6x7xf32>, vector<7x16xf32>, vector<6x16xf32> -> vector<6x16xf32>
    %26 = vector.extract_strided_slice %25 {offsets = [0, 0], sizes = [3, 16], strides = [1, 1]} : vector<6x16xf32> to vector<3x16xf32>
    %27 = vector.extract_strided_slice %25 {offsets = [1, 0], sizes = [3, 16], strides = [1, 1]} : vector<6x16xf32> to vector<3x16xf32>
    %28 = vector.extract_strided_slice %25 {offsets = [2, 0], sizes = [3, 16], strides = [1, 1]} : vector<6x16xf32> to vector<3x16xf32>
    %29 = vector.extract_strided_slice %25 {offsets = [3, 0], sizes = [3, 16], strides = [1, 1]} : vector<6x16xf32> to vector<3x16xf32>
    %30 = tpu.concatenate %26, %27, %28, %29 in 1 : vector<3x16xf32>, vector<3x16xf32>, vector<3x16xf32>, vector<3x16xf32> -> vector<3x64xf32>
    %c88 = arith.constant 88 : index
    %c0_12 = arith.constant 0 : index
    %31 = vector.load %arg2[%c88, %c0_12] : memref<1864x64xf32, #tpu.memory_space<vmem>>, vector<64x32xf32>
    %cst_13 = arith.constant dense<0.000000e+00> : vector<3x32xf32>
    %32 = tpu.matmul %30, %31, %cst_13 {dimension_numbers = #tpu.dot_dimension_numbers<[1], [0], [0], [1], [0, 0, 1, 1], [], []>} : vector<3x64xf32>, vector<64x32xf32>, vector<3x32xf32> -> vector<3x32xf32>
    %c152 = arith.constant 152 : index
    %c0_14 = arith.constant 0 : index
    %33 = vector.load %arg2[%c152, %c0_14] : memref<1864x64xf32, #tpu.memory_space<vmem>>, vector<1x32xf32>
    %34 = vector.broadcast %33 : vector<1x32xf32> to vector<3x32xf32>
    %35 = arith.addf %32, %34 : vector<3x32xf32>
    %c160 = arith.constant 160 : index
    %c0_15 = arith.constant 0 : index
    %36 = vector.load %arg2[%c160, %c0_15] : memref<1864x64xf32, #tpu.memory_space<vmem>>, vector<4x3xf32>
    %cst_16 = arith.constant dense<0.000000e+00> : vector<4x32xf32>
    %37 = tpu.matmul %36, %35, %cst_16 {dimension_numbers = #tpu.dot_dimension_numbers<[1], [0], [0], [1], [0, 0, 1, 1], [], []>} : vector<4x3xf32>, vector<3x32xf32>, vector<4x32xf32> -> vector<4x32xf32>
    %38 = vector.extract_strided_slice %37 {offsets = [0, 0], sizes = [1, 32], strides = [1, 1]} : vector<4x32xf32> to vector<1x32xf32>
    %39 = vector.extract_strided_slice %37 {offsets = [1, 0], sizes = [1, 32], strides = [1, 1]} : vector<4x32xf32> to vector<1x32xf32>
    %40 = vector.extract_strided_slice %37 {offsets = [2, 0], sizes = [1, 32], strides = [1, 1]} : vector<4x32xf32> to vector<1x32xf32>
    %41 = vector.extract_strided_slice %37 {offsets = [3, 0], sizes = [1, 32], strides = [1, 1]} : vector<4x32xf32> to vector<1x32xf32>
    %42 = tpu.concatenate %38, %39, %40, %41 in 1 : vector<1x32xf32>, vector<1x32xf32>, vector<1x32xf32>, vector<1x32xf32> -> vector<1x128xf32>
    %c168 = arith.constant 168 : index
    %c0_17 = arith.constant 0 : index
    %43 = vector.load %arg2[%c168, %c0_17] : memref<1864x64xf32, #tpu.memory_space<vmem>>, vector<128x64xf32>
    %cst_18 = arith.constant dense<0.000000e+00> : vector<1x64xf32>
    %44 = tpu.matmul %42, %43, %cst_18 {dimension_numbers = #tpu.dot_dimension_numbers<[1], [0], [0], [1], [0, 0, 1, 1], [], []>} : vector<1x128xf32>, vector<128x64xf32>, vector<1x64xf32> -> vector<1x64xf32>
    %c296 = arith.constant 296 : index
    %c0_19 = arith.constant 0 : index
    %45 = vector.load %arg2[%c296, %c0_19] : memref<1864x64xf32, #tpu.memory_space<vmem>>, vector<1x64xf32>
    %46 = arith.addf %44, %45 : vector<1x64xf32>
    %c304 = arith.constant 304 : index
    %c0_20 = arith.constant 0 : index
    %47 = vector.load %arg2[%c304, %c0_20] : memref<1864x64xf32, #tpu.memory_space<vmem>>, vector<3x1xf32>
    %cst_21 = arith.constant dense<0.000000e+00> : vector<3x64xf32>
    %48 = tpu.matmul %47, %46, %cst_21 {dimension_numbers = #tpu.dot_dimension_numbers<[1], [0], [0], [1], [0, 0, 1, 1], [], []>} : vector<3x1xf32>, vector<1x64xf32>, vector<3x64xf32> -> vector<3x64xf32>
    %49 = vector.extract_strided_slice %48 {offsets = [0, 0], sizes = [1, 64], strides = [1, 1]} : vector<3x64xf32> to vector<1x64xf32>
    %50 = vector.extract_strided_slice %48 {offsets = [1, 0], sizes = [1, 64], strides = [1, 1]} : vector<3x64xf32> to vector<1x64xf32>
    %51 = vector.extract_strided_slice %48 {offsets = [2, 0], sizes = [1, 64], strides = [1, 1]} : vector<3x64xf32> to vector<1x64xf32>
    %52 = tpu.concatenate %49, %50, %51 in 1 : vector<1x64xf32>, vector<1x64xf32>, vector<1x64xf32> -> vector<1x192xf32>
    %c312 = arith.constant 312 : index
    %c0_22 = arith.constant 0 : index
    %53 = vector.load %arg2[%c312, %c0_22] : memref<1864x64xf32, #tpu.memory_space<vmem>>, vector<192x64xf32>
    %cst_23 = arith.constant dense<0.000000e+00> : vector<1x64xf32>
    %54 = tpu.matmul %52, %53, %cst_23 {dimension_numbers = #tpu.dot_dimension_numbers<[1], [0], [0], [1], [0, 0, 1, 1], [], []>} : vector<1x192xf32>, vector<192x64xf32>, vector<1x64xf32> -> vector<1x64xf32>
    %c504 = arith.constant 504 : index
    %c0_24 = arith.constant 0 : index
    %55 = vector.load %arg2[%c504, %c0_24] : memref<1864x64xf32, #tpu.memory_space<vmem>>, vector<1x64xf32>
    %56 = arith.addf %54, %55 : vector<1x64xf32>
    %c512 = arith.constant 512 : index
    %c0_25 = arith.constant 0 : index
    %57 = vector.load %arg2[%c512, %c0_25] : memref<1864x64xf32, #tpu.memory_space<vmem>>, vector<3x1xf32>
    %cst_26 = arith.constant dense<0.000000e+00> : vector<3x64xf32>
    %58 = tpu.matmul %57, %56, %cst_26 {dimension_numbers = #tpu.dot_dimension_numbers<[1], [0], [0], [1], [0, 0, 1, 1], [], []>} : vector<3x1xf32>, vector<1x64xf32>, vector<3x64xf32> -> vector<3x64xf32>
    %59 = vector.extract_strided_slice %58 {offsets = [1, 0], sizes = [1, 64], strides = [1, 1]} : vector<3x64xf32> to vector<1x64xf32>
    %60 = vector.extract_strided_slice %48 {offsets = [1, 0], sizes = [1, 64], strides = [1, 1]} : vector<3x64xf32> to vector<1x64xf32>
    %61 = vector.extract_strided_slice %58 {offsets = [0, 0], sizes = [1, 64], strides = [1, 1]} : vector<3x64xf32> to vector<1x64xf32>
    %62 = vector.extract_strided_slice %48 {offsets = [0, 0], sizes = [1, 64], strides = [1, 1]} : vector<3x64xf32> to vector<1x64xf32>
    %63 = tpu.concatenate %59, %60, %61, %62 in 1 : vector<1x64xf32>, vector<1x64xf32>, vector<1x64xf32>, vector<1x64xf32> -> vector<1x256xf32>
    %64 = vector.extract_strided_slice %58 {offsets = [1, 0], sizes = [1, 64], strides = [1, 1]} : vector<3x64xf32> to vector<1x64xf32>
    %65 = vector.extract_strided_slice %48 {offsets = [1, 0], sizes = [1, 64], strides = [1, 1]} : vector<3x64xf32> to vector<1x64xf32>
    %66 = vector.extract_strided_slice %58 {offsets = [2, 0], sizes = [1, 64], strides = [1, 1]} : vector<3x64xf32> to vector<1x64xf32>
    %67 = vector.extract_strided_slice %48 {offsets = [2, 0], sizes = [1, 64], strides = [1, 1]} : vector<3x64xf32> to vector<1x64xf32>
    %68 = tpu.concatenate %64, %65, %66, %67 in 1 : vector<1x64xf32>, vector<1x64xf32>, vector<1x64xf32>, vector<1x64xf32> -> vector<1x256xf32>
    %c520 = arith.constant 520 : index
    %c0_27 = arith.constant 0 : index
    %69 = vector.load %arg2[%c520, %c0_27] : memref<1864x64xf32, #tpu.memory_space<vmem>>, vector<256x64xf32>
    %cst_28 = arith.constant dense<0.000000e+00> : vector<1x64xf32>
    %70 = tpu.matmul %63, %69, %cst_28 {dimension_numbers = #tpu.dot_dimension_numbers<[1], [0], [0], [1], [0, 0, 1, 1], [], []>} : vector<1x256xf32>, vector<256x64xf32>, vector<1x64xf32> -> vector<1x64xf32>
    %c1032 = arith.constant 1032 : index
    %c0_29 = arith.constant 0 : index
    %71 = vector.load %arg2[%c1032, %c0_29] : memref<1864x64xf32, #tpu.memory_space<vmem>>, vector<1x64xf32>
    %72 = arith.addf %70, %71 : vector<1x64xf32>
    %c776 = arith.constant 776 : index
    %c0_30 = arith.constant 0 : index
    %73 = vector.load %arg2[%c776, %c0_30] : memref<1864x64xf32, #tpu.memory_space<vmem>>, vector<256x64xf32>
    %cst_31 = arith.constant dense<0.000000e+00> : vector<1x64xf32>
    %74 = tpu.matmul %68, %73, %cst_31 {dimension_numbers = #tpu.dot_dimension_numbers<[1], [0], [0], [1], [0, 0, 1, 1], [], []>} : vector<1x256xf32>, vector<256x64xf32>, vector<1x64xf32> -> vector<1x64xf32>
    %c1032_32 = arith.constant 1032 : index
    %c0_33 = arith.constant 0 : index
    %75 = vector.load %arg2[%c1032_32, %c0_33] : memref<1864x64xf32, #tpu.memory_space<vmem>>, vector<1x64xf32>
    %76 = arith.addf %74, %75 : vector<1x64xf32>
    %c1040 = arith.constant 1040 : index
    %c0_34 = arith.constant 0 : index
    %77 = vector.load %arg2[%c1040, %c0_34] : memref<1864x64xf32, #tpu.memory_space<vmem>>, vector<4x1xf32>
    %cst_35 = arith.constant dense<0.000000e+00> : vector<4x64xf32>
    %78 = tpu.matmul %77, %72, %cst_35 {dimension_numbers = #tpu.dot_dimension_numbers<[1], [0], [0], [1], [0, 0, 1, 1], [], []>} : vector<4x1xf32>, vector<1x64xf32>, vector<4x64xf32> -> vector<4x64xf32>
    %c1048 = arith.constant 1048 : index
    %c0_36 = arith.constant 0 : index
    %79 = vector.load %arg2[%c1048, %c0_36] : memref<1864x64xf32, #tpu.memory_space<vmem>>, vector<4x1xf32>
    %cst_37 = arith.constant dense<0.000000e+00> : vector<4x64xf32>
    %80 = tpu.matmul %79, %76, %cst_37 {dimension_numbers = #tpu.dot_dimension_numbers<[1], [0], [0], [1], [0, 0, 1, 1], [], []>} : vector<4x1xf32>, vector<1x64xf32>, vector<4x64xf32> -> vector<4x64xf32>
    %81 = arith.addf %78, %80 : vector<4x64xf32>
    %82 = vector.extract_strided_slice %81 {offsets = [1, 0], sizes = [2, 64], strides = [1, 1]} : vector<4x64xf32> to vector<2x64xf32>
    %83 = vector.extract_strided_slice %37 {offsets = [1, 0], sizes = [2, 32], strides = [1, 1]} : vector<4x32xf32> to vector<2x32xf32>
    %84 = vector.extract_strided_slice %81 {offsets = [0, 0], sizes = [2, 64], strides = [1, 1]} : vector<4x64xf32> to vector<2x64xf32>
    %85 = vector.extract_strided_slice %37 {offsets = [0, 0], sizes = [2, 32], strides = [1, 1]} : vector<4x32xf32> to vector<2x32xf32>
    %86 = tpu.concatenate %82, %83, %84, %85 in 1 : vector<2x64xf32>, vector<2x32xf32>, vector<2x64xf32>, vector<2x32xf32> -> vector<2x192xf32>
    %87 = vector.extract_strided_slice %81 {offsets = [1, 0], sizes = [2, 64], strides = [1, 1]} : vector<4x64xf32> to vector<2x64xf32>
    %88 = vector.extract_strided_slice %37 {offsets = [1, 0], sizes = [2, 32], strides = [1, 1]} : vector<4x32xf32> to vector<2x32xf32>
    %89 = vector.extract_strided_slice %81 {offsets = [2, 0], sizes = [2, 64], strides = [1, 1]} : vector<4x64xf32> to vector<2x64xf32>
    %90 = vector.extract_strided_slice %37 {offsets = [2, 0], sizes = [2, 32], strides = [1, 1]} : vector<4x32xf32> to vector<2x32xf32>
    %91 = tpu.concatenate %87, %88, %89, %90 in 1 : vector<2x64xf32>, vector<2x32xf32>, vector<2x64xf32>, vector<2x32xf32> -> vector<2x192xf32>
    %c1056 = arith.constant 1056 : index
    %c0_38 = arith.constant 0 : index
    %92 = vector.load %arg2[%c1056, %c0_38] : memref<1864x64xf32, #tpu.memory_space<vmem>>, vector<192x32xf32>
    %cst_39 = arith.constant dense<0.000000e+00> : vector<2x32xf32>
    %93 = tpu.matmul %86, %92, %cst_39 {dimension_numbers = #tpu.dot_dimension_numbers<[1], [0], [0], [1], [0, 0, 1, 1], [], []>} : vector<2x192xf32>, vector<192x32xf32>, vector<2x32xf32> -> vector<2x32xf32>
    %c1440 = arith.constant 1440 : index
    %c0_40 = arith.constant 0 : index
    %94 = vector.load %arg2[%c1440, %c0_40] : memref<1864x64xf32, #tpu.memory_space<vmem>>, vector<1x32xf32>
    %95 = vector.broadcast %94 : vector<1x32xf32> to vector<2x32xf32>
    %96 = arith.addf %93, %95 : vector<2x32xf32>
    %c1248 = arith.constant 1248 : index
    %c0_41 = arith.constant 0 : index
    %97 = vector.load %arg2[%c1248, %c0_41] : memref<1864x64xf32, #tpu.memory_space<vmem>>, vector<192x32xf32>
    %cst_42 = arith.constant dense<0.000000e+00> : vector<2x32xf32>
    %98 = tpu.matmul %91, %97, %cst_42 {dimension_numbers = #tpu.dot_dimension_numbers<[1], [0], [0], [1], [0, 0, 1, 1], [], []>} : vector<2x192xf32>, vector<192x32xf32>, vector<2x32xf32> -> vector<2x32xf32>
    %c1440_43 = arith.constant 1440 : index
    %c0_44 = arith.constant 0 : index
    %99 = vector.load %arg2[%c1440_43, %c0_44] : memref<1864x64xf32, #tpu.memory_space<vmem>>, vector<1x32xf32>
    %100 = vector.broadcast %99 : vector<1x32xf32> to vector<2x32xf32>
    %101 = arith.addf %98, %100 : vector<2x32xf32>
    %c1448 = arith.constant 1448 : index
    %c0_45 = arith.constant 0 : index
    %102 = vector.load %arg2[%c1448, %c0_45] : memref<1864x64xf32, #tpu.memory_space<vmem>>, vector<6x2xf32>
    %cst_46 = arith.constant dense<0.000000e+00> : vector<6x32xf32>
    %103 = tpu.matmul %102, %96, %cst_46 {dimension_numbers = #tpu.dot_dimension_numbers<[1], [0], [0], [1], [0, 0, 1, 1], [], []>} : vector<6x2xf32>, vector<2x32xf32>, vector<6x32xf32> -> vector<6x32xf32>
    %c1456 = arith.constant 1456 : index
    %c0_47 = arith.constant 0 : index
    %104 = vector.load %arg2[%c1456, %c0_47] : memref<1864x64xf32, #tpu.memory_space<vmem>>, vector<6x2xf32>
    %cst_48 = arith.constant dense<0.000000e+00> : vector<6x32xf32>
    %105 = tpu.matmul %104, %101, %cst_48 {dimension_numbers = #tpu.dot_dimension_numbers<[1], [0], [0], [1], [0, 0, 1, 1], [], []>} : vector<6x2xf32>, vector<2x32xf32>, vector<6x32xf32> -> vector<6x32xf32>
    %106 = arith.addf %103, %105 : vector<6x32xf32>
    %107 = vector.extract_strided_slice %106 {offsets = [1, 0], sizes = [4, 32], strides = [1, 1]} : vector<6x32xf32> to vector<4x32xf32>
    %108 = vector.extract_strided_slice %25 {offsets = [1, 0], sizes = [4, 16], strides = [1, 1]} : vector<6x16xf32> to vector<4x16xf32>
    %109 = vector.extract_strided_slice %106 {offsets = [0, 0], sizes = [4, 32], strides = [1, 1]} : vector<6x32xf32> to vector<4x32xf32>
    %110 = vector.extract_strided_slice %25 {offsets = [0, 0], sizes = [4, 16], strides = [1, 1]} : vector<6x16xf32> to vector<4x16xf32>
    %111 = tpu.concatenate %107, %108, %109, %110 in 1 : vector<4x32xf32>, vector<4x16xf32>, vector<4x32xf32>, vector<4x16xf32> -> vector<4x96xf32>
    %112 = vector.extract_strided_slice %106 {offsets = [1, 0], sizes = [4, 32], strides = [1, 1]} : vector<6x32xf32> to vector<4x32xf32>
    %113 = vector.extract_strided_slice %25 {offsets = [1, 0], sizes = [4, 16], strides = [1, 1]} : vector<6x16xf32> to vector<4x16xf32>
    %114 = vector.extract_strided_slice %106 {offsets = [2, 0], sizes = [4, 32], strides = [1, 1]} : vector<6x32xf32> to vector<4x32xf32>
    %115 = vector.extract_strided_slice %25 {offsets = [2, 0], sizes = [4, 16], strides = [1, 1]} : vector<6x16xf32> to vector<4x16xf32>
    %116 = tpu.concatenate %112, %113, %114, %115 in 1 : vector<4x32xf32>, vector<4x16xf32>, vector<4x32xf32>, vector<4x16xf32> -> vector<4x96xf32>
    %c1464 = arith.constant 1464 : index
    %c0_49 = arith.constant 0 : index
    %117 = vector.load %arg2[%c1464, %c0_49] : memref<1864x64xf32, #tpu.memory_space<vmem>>, vector<96x16xf32>
    %cst_50 = arith.constant dense<0.000000e+00> : vector<4x16xf32>
    %118 = tpu.matmul %111, %117, %cst_50 {dimension_numbers = #tpu.dot_dimension_numbers<[1], [0], [0], [1], [0, 0, 1, 1], [], []>} : vector<4x96xf32>, vector<96x16xf32>, vector<4x16xf32> -> vector<4x16xf32>
    %c1656 = arith.constant 1656 : index
    %c0_51 = arith.constant 0 : index
    %119 = vector.load %arg2[%c1656, %c0_51] : memref<1864x64xf32, #tpu.memory_space<vmem>>, vector<1x16xf32>
    %120 = vector.broadcast %119 : vector<1x16xf32> to vector<4x16xf32>
    %121 = arith.addf %118, %120 : vector<4x16xf32>
    %c1560 = arith.constant 1560 : index
    %c0_52 = arith.constant 0 : index
    %122 = vector.load %arg2[%c1560, %c0_52] : memref<1864x64xf32, #tpu.memory_space<vmem>>, vector<96x16xf32>
    %cst_53 = arith.constant dense<0.000000e+00> : vector<4x16xf32>
    %123 = tpu.matmul %116, %122, %cst_53 {dimension_numbers = #tpu.dot_dimension_numbers<[1], [0], [0], [1], [0, 0, 1, 1], [], []>} : vector<4x96xf32>, vector<96x16xf32>, vector<4x16xf32> -> vector<4x16xf32>
    %c1656_54 = arith.constant 1656 : index
    %c0_55 = arith.constant 0 : index
    %124 = vector.load %arg2[%c1656_54, %c0_55] : memref<1864x64xf32, #tpu.memory_space<vmem>>, vector<1x16xf32>
    %125 = vector.broadcast %124 : vector<1x16xf32> to vector<4x16xf32>
    %126 = arith.addf %123, %125 : vector<4x16xf32>
    %c1664 = arith.constant 1664 : index
    %c0_56 = arith.constant 0 : index
    %127 = vector.load %arg2[%c1664, %c0_56] : memref<1864x64xf32, #tpu.memory_space<vmem>>, vector<10x4xf32>
    %cst_57 = arith.constant dense<0.000000e+00> : vector<10x16xf32>
    %128 = tpu.matmul %127, %121, %cst_57 {dimension_numbers = #tpu.dot_dimension_numbers<[1], [0], [0], [1], [0, 0, 1, 1], [], []>} : vector<10x4xf32>, vector<4x16xf32>, vector<10x16xf32> -> vector<10x16xf32>
    %c1680 = arith.constant 1680 : index
    %c0_58 = arith.constant 0 : index
    %129 = vector.load %arg2[%c1680, %c0_58] : memref<1864x64xf32, #tpu.memory_space<vmem>>, vector<10x4xf32>
    %cst_59 = arith.constant dense<0.000000e+00> : vector<10x16xf32>
    %130 = tpu.matmul %129, %126, %cst_59 {dimension_numbers = #tpu.dot_dimension_numbers<[1], [0], [0], [1], [0, 0, 1, 1], [], []>} : vector<10x4xf32>, vector<4x16xf32>, vector<10x16xf32> -> vector<10x16xf32>
    %131 = arith.addf %128, %130 : vector<10x16xf32>
    %132 = vector.extract_strided_slice %131 {offsets = [1, 0], sizes = [8, 16], strides = [1, 1]} : vector<10x16xf32> to vector<8x16xf32>
    %133 = vector.extract_strided_slice %13 {offsets = [1, 0], sizes = [8, 8], strides = [1, 1]} : vector<10x8xf32> to vector<8x8xf32>
    %134 = vector.extract_strided_slice %131 {offsets = [0, 0], sizes = [8, 16], strides = [1, 1]} : vector<10x16xf32> to vector<8x16xf32>
    %135 = vector.extract_strided_slice %13 {offsets = [0, 0], sizes = [8, 8], strides = [1, 1]} : vector<10x8xf32> to vector<8x8xf32>
    %136 = tpu.concatenate %132, %133, %134, %135 in 1 : vector<8x16xf32>, vector<8x8xf32>, vector<8x16xf32>, vector<8x8xf32> -> vector<8x48xf32>
    %137 = vector.extract_strided_slice %131 {offsets = [1, 0], sizes = [8, 16], strides = [1, 1]} : vector<10x16xf32> to vector<8x16xf32>
    %138 = vector.extract_strided_slice %13 {offsets = [1, 0], sizes = [8, 8], strides = [1, 1]} : vector<10x8xf32> to vector<8x8xf32>
    %139 = vector.extract_strided_slice %131 {offsets = [2, 0], sizes = [8, 16], strides = [1, 1]} : vector<10x16xf32> to vector<8x16xf32>
    %140 = vector.extract_strided_slice %13 {offsets = [2, 0], sizes = [8, 8], strides = [1, 1]} : vector<10x8xf32> to vector<8x8xf32>
    %141 = tpu.concatenate %137, %138, %139, %140 in 1 : vector<8x16xf32>, vector<8x8xf32>, vector<8x16xf32>, vector<8x8xf32> -> vector<8x48xf32>
    %c1696 = arith.constant 1696 : index
    %c0_60 = arith.constant 0 : index
    %142 = vector.load %arg2[%c1696, %c0_60] : memref<1864x64xf32, #tpu.memory_space<vmem>>, vector<48x8xf32>
    %cst_61 = arith.constant dense<0.000000e+00> : vector<8x8xf32>
    %143 = tpu.matmul %136, %142, %cst_61 {dimension_numbers = #tpu.dot_dimension_numbers<[1], [0], [0], [1], [0, 0, 1, 1], [], []>} : vector<8x48xf32>, vector<48x8xf32>, vector<8x8xf32> -> vector<8x8xf32>
    %c1792 = arith.constant 1792 : index
    %c0_62 = arith.constant 0 : index
    %144 = vector.load %arg2[%c1792, %c0_62] : memref<1864x64xf32, #tpu.memory_space<vmem>>, vector<1x8xf32>
    %145 = vector.broadcast %144 : vector<1x8xf32> to vector<8x8xf32>
    %146 = arith.addf %143, %145 : vector<8x8xf32>
    %c1744 = arith.constant 1744 : index
    %c0_63 = arith.constant 0 : index
    %147 = vector.load %arg2[%c1744, %c0_63] : memref<1864x64xf32, #tpu.memory_space<vmem>>, vector<48x8xf32>
    %cst_64 = arith.constant dense<0.000000e+00> : vector<8x8xf32>
    %148 = tpu.matmul %141, %147, %cst_64 {dimension_numbers = #tpu.dot_dimension_numbers<[1], [0], [0], [1], [0, 0, 1, 1], [], []>} : vector<8x48xf32>, vector<48x8xf32>, vector<8x8xf32> -> vector<8x8xf32>
    %c1792_65 = arith.constant 1792 : index
    %c0_66 = arith.constant 0 : index
    %149 = vector.load %arg2[%c1792_65, %c0_66] : memref<1864x64xf32, #tpu.memory_space<vmem>>, vector<1x8xf32>
    %150 = vector.broadcast %149 : vector<1x8xf32> to vector<8x8xf32>
    %151 = arith.addf %148, %150 : vector<8x8xf32>
    %c1800 = arith.constant 1800 : index
    %c0_67 = arith.constant 0 : index
    %152 = vector.load %arg2[%c1800, %c0_67] : memref<1864x64xf32, #tpu.memory_space<vmem>>, vector<18x8xf32>
    %cst_68 = arith.constant dense<0.000000e+00> : vector<18x8xf32>
    %153 = tpu.matmul %152, %146, %cst_68 {dimension_numbers = #tpu.dot_dimension_numbers<[1], [0], [0], [1], [0, 0, 1, 1], [], []>} : vector<18x8xf32>, vector<8x8xf32>, vector<18x8xf32> -> vector<18x8xf32>
    %c1824 = arith.constant 1824 : index
    %c0_69 = arith.constant 0 : index
    %154 = vector.load %arg2[%c1824, %c0_69] : memref<1864x64xf32, #tpu.memory_space<vmem>>, vector<18x8xf32>
    %cst_70 = arith.constant dense<0.000000e+00> : vector<18x8xf32>
    %155 = tpu.matmul %154, %151, %cst_70 {dimension_numbers = #tpu.dot_dimension_numbers<[1], [0], [0], [1], [0, 0, 1, 1], [], []>} : vector<18x8xf32>, vector<8x8xf32>, vector<18x8xf32> -> vector<18x8xf32>
    %156 = arith.addf %153, %155 : vector<18x8xf32>
    %157 = vector.extract_strided_slice %156 {offsets = [1, 0], sizes = [16, 8], strides = [1, 1]} : vector<18x8xf32> to vector<16x8xf32>
    %c1848 = arith.constant 1848 : index
    %c0_71 = arith.constant 0 : index
    %158 = vector.load %arg2[%c1848, %c0_71] : memref<1864x64xf32, #tpu.memory_space<vmem>>, vector<8x4xf32>
    %cst_72 = arith.constant dense<0.000000e+00> : vector<16x4xf32>
    %159 = tpu.matmul %157, %158, %cst_72 {dimension_numbers = #tpu.dot_dimension_numbers<[1], [0], [0], [1], [0, 0, 1, 1], [], []>} : vector<16x8xf32>, vector<8x4xf32>, vector<16x4xf32> -> vector<16x4xf32>
    %c1856 = arith.constant 1856 : index
    %c0_73 = arith.constant 0 : index
    %160 = vector.load %arg2[%c1856, %c0_73] : memref<1864x64xf32, #tpu.memory_space<vmem>>, vector<1x4xf32>
    %161 = vector.broadcast %160 : vector<1x4xf32> to vector<16x4xf32>
    %162 = arith.addf %159, %161 : vector<16x4xf32>
    %c0_74 = arith.constant 0 : index
    %c0_75 = arith.constant 0 : index
    %c0_76 = arith.constant 0 : index
    %163 = vector.load %arg3[%c0_74, %c0_75, %c0_76] : memref<1x16x4xf32, #tpu.memory_space<vmem>>, vector<1x16x4xf32>
    %164 = vector.shape_cast %163 : vector<1x16x4xf32> to vector<16x4xf32>
    %165 = vector.shape_cast %162 : vector<16x4xf32> to vector<1x16x4xf32>
    tpu.vector_store %arg3[%c0_74, %c0_75, %c0_76], %165 {strides = array<i32>} : memref<1x16x4xf32, #tpu.memory_space<vmem>>, vector<1x16x4xf32>,
    return
  }
  func.func @transform_0(%arg0: i32) -> (i32, i32, i32) {
    %c0_i32 = arith.constant 0 : i32
    %c0_i32_0 = arith.constant 0 : i32
    %c0_i32_1 = arith.constant 0 : i32
    return %arg0, %c0_i32, %c0_i32_0 : i32, i32, i32
  }
  func.func @transform_1(%arg0: i32) -> (i32, i32) {
    %c0_i32 = arith.constant 0 : i32
    %c0_i32_0 = arith.constant 0 : i32
    %c0_i32_1 = arith.constant 0 : i32
    return %c0_i32, %c0_i32_0 : i32, i32
  }
  func.func @transform_2(%arg0: i32) -> (i32, i32, i32) {
    %c0_i32 = arith.constant 0 : i32
    %c0_i32_0 = arith.constant 0 : i32
    %c0_i32_1 = arith.constant 0 : i32
    return %arg0, %c0_i32, %c0_i32_0 : i32, i32, i32
  }
}

</mosaic_0001>

<bundles_post_ra>
// kernel: unet1d_forward.1
= control target key start
LH: loop header
LB: loop body
LE: loop exit
PB: predicated region body
PF: predicated region fallthrough
CT: control target
= control target key end

     0   :  { %s1618_s9 = smov 0   ;;  %s2507_s0 = inlined_call_operand.vmem [shape: f32[2,18,4], index: 0, kind: input, shape index: {}]   ;;  %s2508_s1 = inlined_call_operand.vmem [shape: f32[1864,64], index: 1, kind: input, shape index: {}]   ;;  %s2509_s2 = inlined_call_operand.vmem [shape: f32[2,16,4], index: 2, kind: output, shape index: {}]  }
   0x1 LB: > { %s1501_s10 = sadd.s32 4294967295, %s1590_s9   ;;  %p1505_p0 = scmp.ge.s32.totalorder %s1590_s9, 1  ;;  %s1590_s9 = sphi %s1618_s9, %s12_s9  }
   0x2   : > { %p112_p1 = scmp.lt.s32.totalorder %s1590_s9, 3 }
   0x4   : > { %p113_p2 = pnand %p1505_p0, %p112_p1 }
   0x5   : > { %p134_p3 = scmp.lt.s32.totalorder (!%p113_p2), %s1501_s10, 1  ;;  %s1592_s15 = smov (!%p113_p2), 12  }
   0x6   : > { %116 = sbr.rel (%p113_p2) target bundleno = 3541 (0xdd5), region = 28  ;;  %s1593_s16 = smov (!%p113_p2), 4  }
   0x7   : > { %s1594_s17 = smov (!%p113_p2), 8   ;;  %s1595_s28 = smov (!%p113_p2), 24  }
   0x8   : > { %s1596_s29 = smov (!%p113_p2), 16   ;;  %s1599_s20 = smov (!%p113_p2), 96  }
   0x9   : > { %s1600_s21 = smov (!%p113_p2), 64   ;;  %s1601_s22 = smov (!%p113_p2), 80  }
   0xa   : > { %s1602_s7 = smov (!%p113_p2), 40  }
   0xb   : > { %s2511_s10 = smov (!%p134_p3, %s1501_s10), 1  ;;  %vm172_vm0 = vcmask 1044480   ;;  %vm149_vm1 = vcmask 1046528   ;;  %vm160_vm2 = vcmask 1045504   ;;  %v194_v16 = vld [vmem:[%s2508_s1 + $0x8] sm:$0xff]  ;;  %v193_v17 = vld [vmem:[%s2508_s1] sm:$0xff] }
   0xc   : > { %s1557_s11 = smul.u32 24, %s2511_s10  ;;  %218 = vmatpush.msra.mxu0 %v194_v16  ;;  %vm184_vm3 = vcmask 31744   ;;  %vm187_vm4 = vcmask 64512   ;;  %vm190_vm5 = vcmask 97280   ;;  %vm197_vm6 = vcmask 130048   ;;  %v227_v35 = vld [vmem:[%s2508_s1 + $0x18] sm:$0xff] }
   0xd   : > { %v1577_v31 = vld [vmem:[%s2508_s1 + $0x10] ss:$0 sm:$0xff]  ;;  %vm229_vm7 = vcmask 121856   ;;  %v228_v36 = vld [vmem:[%s2508_s1 + $0x20] sm:$0x3]  ;;  %v286_v47 = vld [vmem:[%s2508_s1 + $0x38] sm:$0xff] }
   0xe   : > { %s138_s14 = scalar_lea.vmem %s2507_s0, %s1557_s11  ;;  %219 = vmatpush.msra.mxu0 %v193_v17  ;;  %v287_v46 = vld [vmem:[%s2508_s1 + $0x40] sm:$0xff]  ;;  %v285_v48 = vld [vmem:[%s2508_s1 + $0x30] sm:$0xff]  ;;  %v284_v49 = vld [vmem:[%s2508_s1 + $0x28] sm:$0xff]  ;;  %vm282_vm8 = vcmask 195584   ;;  %vm290_vm9 = vcmask 261120   ;;  %vm315_vm10 = vcmask 56320  }
   0xf   : > { %v144_v0 = vld [vmem:[%s138_s14] sm:$0xff]  ;;  %v145_v1 = vld [vmem:[%s138_s14 + $0x8] sm:$0xff]  ;;  %v146_v2 = vld [vmem:[%s138_s14 + $0x10] sm:$0x3]  ;;  %306 = vmatpush.msra.mxu2 %v287_v46  ;;  %vm357_vm11 = vcmask 392192   ;;  %vm369_vm12 = vcmask 523264  }
  0x10   : > { %v173_v3 = vrot.slane %v144_v0, 3  ;;  %v174_v4 = vrot.slane %v145_v1, 3  ;;  %v150_v5 = vrot.slane %v144_v0, 1  ;;  %v151_v6 = vrot.slane %v145_v1, 1  ;;  %v1578_v56 = vld [vmem:[%s2508_s1 + $0x48] ss:$0 sm:$0xff] }
  0x11   : > { %v162_v7 = vrot.slane %v145_v1, 2  ;;  %v164_v8 = vrot.slane %v146_v2, 2  ;;  %v161_v12 = vrot.slane %v144_v0, 2  ;;  %v176_v13 = vrot.slane %v146_v2, 3  ;;  %307 = vmatpush.msra.mxu2 %v286_v47  ;;  %v314_v59 = vld [vmem:[%s2508_s1 + $0x50] sm:$0x3f] }
  0x12   : > { %v175_v9 = vsel %vm172_vm0, %v173_v3, %v174_v4  ;;  %v152_v10 = vsel %vm149_vm1, %v150_v5, %v151_v6  ;;  %v364_v2 = vld [vmem:[%s2508_s1 + $0x80] sm:$0xff]  ;;  %v363_v3 = vld [vmem:[%s2508_s1 + $0x78] sm:$0xff]  ;;  %v361_v5 = vld [vmem:[%s2508_s1 + $0x68] sm:$0xff]  ;;  %vm398_vm13 = vcmask 1042432   ;;  %vm394_vm14 = vcmask 23552   ;;  %s1555_s8 = sshll.u32 %s2511_s10, 4 }
  0x13   : > { %178 = vrot.lane.b32.xlu1 %v175_v9, %s1592_s15  ;;  %153 = vrot.lane.b32.xlu0 %v152_v10, %s1593_s16  ;;  %v165_v11 = vsel %vm160_vm2, %v162_v7, %v164_v8  ;;  %v163_v14 = vsel %vm160_vm2, %v161_v12, %v162_v7  ;;  %v177_v15 = vsel %vm172_vm0, %v174_v4, %v176_v13  ;;  %v362_v4 = vld [vmem:[%s2508_s1 + $0x70] sm:$0xff]  ;;  %v359_v7 = vld [vmem:[%s2508_s1 + $0x58] sm:$0xff]  ;;  %vm437_vm15 = vcmask 785408  }
  0x14   : > { %168 = vrot.lane.b32.xlu2 %v165_v11, %s1594_s17  ;;  %308 = vmatpush.msra.mxu2 %v285_v48  ;;  %v393_v17 = vld [vmem:[%s2508_s1 + $0xa0] sm:$0xf]  ;;  %v535_v47 = vld [vmem:[%s2508_s1 + $0x1f0] sm:$0xff]  ;;  %v534_v48 = vld [vmem:[%s2508_s1 + $0x1e8] sm:$0xff] }
  0x16   : > { %309 = vmatpush.msra.mxu2 %v284_v49  ;;  %v455_v49 = vld [vmem:[%s2508_s1 + $0x128] sm:$0x1] }
  0x1b   : > { %155 = vrot.lane.b32.xlu1 %v151_v6, %s1593_s16  ;;  %166 = vrot.lane.b32.xlu0 %v163_v14, %s1594_s17  ;;  %s1597_s16 = smov 48   ;;  %v360_v6 = vld [vmem:[%s2508_s1 + $0x60] sm:$0xff]  ;;  %v1579_v14 = vld [vmem:[%s2508_s1 + $0x98] ss:$0 sm:$0xff] }
  0x1c   : > { %180 = vrot.lane.b32.xlu2 %v177_v15, %s1592_s15  ;;  %s143_s15 = scalar_lea.vmem %s2509_s2, %s1555_s8 }
  0x6e   : > { %v169_v20 = vpop.permute.xlu2 %168 }
  0x76   : > { %v181_v27 = vpop.permute.xlu2 %180 }
  0x85   : > { %v179_v18 = vpop.permute.xlu1 %178  ;;  %v154_v19 = vpop.permute.xlu0 %153 }
  0x86   : > { %v185_v21 = vsel %vm184_vm3, %v144_v0, %v154_v19  ;;  %v366_v0 = vld [vmem:[%s2508_s1 + $0x90] sm:$0xff]  ;;  %v453_v19 = vld [vmem:[%s2508_s1 + $0x118] sm:$0xff] }
  0x8d   : > { %v167_v22 = vpop.permute.xlu0 %166  ;;  %v156_v23 = vpop.permute.xlu1 %155 }
  0x8e   : > { %v188_v24 = vsel %vm187_vm4, %v185_v21, %v167_v22  ;;  %v186_v26 = vsel %vm184_vm3, %v145_v1, %v156_v23  ;;  %v365_v1 = vld [vmem:[%s2508_s1 + $0x88] sm:$0xff] }
  0x8f   : > { %v191_v25 = vsel %vm190_vm5, %v188_v24, %v179_v18  ;;  %v189_v28 = vsel %vm187_vm4, %v186_v26, %v169_v20  ;;  %v454_v18 = vld [vmem:[%s2508_s1 + $0x120] sm:$0xff]  ;;  %v452_v24 = vld [vmem:[%s2508_s1 + $0x110] sm:$0xff] }
  0x90   : > { %1509 = vmatmul.msk.f32.vlgmr.msra.gmra.mxu0 %vm197_vm6, %v191_v25  ;;  %v192_v29 = vsel %vm190_vm5, %v189_v28, %v181_v27  ;;  %v451_v25 = vld [vmem:[%s2508_s1 + $0x108] sm:$0xff]  ;;  %v450_v26 = vld [vmem:[%s2508_s1 + $0x100] sm:$0xff]  ;;  %v449_v27 = vld [vmem:[%s2508_s1 + $0xf8] sm:$0xff]  ;;  %vm1000_vm5 = vcmask 1041408  }
  0x91   : > { %456 = vmatpush.msrb.mxu0 %v454_v18  ;;  %v448_v28 = vld [vmem:[%s2508_s1 + $0xf0] sm:$0xff]  ;;  %v512_v18 = vld [vmem:[%s2508_s1 + $0x138] sm:$0xff] }
  0x93   : > { %457 = vmatpush.msrb.mxu0 %v453_v19 }
  0x95   : > { %458 = vmatpush.msrb.mxu0 %v452_v24  ;;  %v731_v24 = vld [vmem:[%s2508_s1 + $0x400] sm:$0xff] }
  0x97   : > { %459 = vmatpush.msrb.mxu0 %v451_v25  ;;  %v651_v25 = vld [vmem:[%s2508_s1 + $0x2f8] sm:$0xff] }
  0x98   : > { %1510 = vmatmul.msk.f32.gmra.mxu0 %vm197_vm6, %v192_v29  ;;  %v447_v29 = vld [vmem:[%s2508_s1 + $0xe8] sm:$0xff] }
  0x99   : > { %460 = vmatpush.msrb.mxu0 %v450_v26  ;;  %v713_v26 = vld [vmem:[%s2508_s1 + $0x370] sm:$0xff] }
  0x9b   : > { %461 = vmatpush.msrb.mxu0 %v449_v27  ;;  %v730_v27 = vld [vmem:[%s2508_s1 + $0x3f8] sm:$0xff] }
  0x9d   : > { %462 = vmatpush.msrb.mxu0 %v448_v28  ;;  %v650_v28 = vld [vmem:[%s2508_s1 + $0x2f0] sm:$0xff] }
  0x9f   : > { %463 = vmatpush.msrb.mxu0 %v447_v29  ;;  %v712_v29 = vld [vmem:[%s2508_s1 + $0x368] sm:$0xff] }
 0x10d   : > { %v221_v30 = vpop.f32.mrf.mxu0 }
 0x10e   : > { %v222_v34 = vadd.f32 %v1577_v31, %v221_v30  ;;  %v446_v30 = vld [vmem:[%s2508_s1 + $0xe0] sm:$0xff] }
 0x10f   : > { %464 = vmatpush.msrb.mxu0 %v446_v30  ;;  %v729_v30 = vld [vmem:[%s2508_s1 + $0x3f0] sm:$0xff] }
 0x115   : > { %v224_v32 = vpop.f32.mrf.mxu0 }
 0x116   : > { %v225_v33 = vadd.f32 %v1577_v31, %v224_v32  ;;  %v445_v31 = vld [vmem:[%s2508_s1 + $0xd8] sm:$0xff]  ;;  %v444_v32 = vld [vmem:[%s2508_s1 + $0xd0] sm:$0xff] }
 0x117   : > { %465 = vmatpush.msrb.mxu0 %v445_v31  ;;  %v649_v31 = vld [vmem:[%s2508_s1 + $0x2e8] sm:$0xff] }
 0x118   : > { %1511 = vmatpush.msk.msra.mxu1 %vm149_vm1, %v225_v33  ;;  %v443_v33 = vld [vmem:[%s2508_s1 + $0xc8] sm:$0xff] }
 0x119   : > { %466 = vmatpush.msrb.mxu0 %v444_v32  ;;  %v711_v32 = vld [vmem:[%s2508_s1 + $0x360] sm:$0xff] }
 0x11a   : > { %254 = vmatpush.msra.mxu1 %v222_v34  ;;  %v442_v34 = vld [vmem:[%s2508_s1 + $0xc0] sm:$0xff] }
 0x11b   : > { %1512 = vmatmul.msk.f32.vlgmr.msra.gmra.mxu1 %vm229_vm7, %v227_v35  ;;  %467 = vmatpush.msrb.mxu0 %v443_v33  ;;  %v441_v35 = vld [vmem:[%s2508_s1 + $0xb8] sm:$0xff]  ;;  %v728_v33 = vld [vmem:[%s2508_s1 + $0x3e8] sm:$0xff] }
 0x11d   : > { %468 = vmatpush.msrb.mxu0 %v442_v34  ;;  %v648_v34 = vld [vmem:[%s2508_s1 + $0x2e0] sm:$0xff] }
 0x11f   : > { %469 = vmatpush.msrb.mxu0 %v441_v35  ;;  %v710_v35 = vld [vmem:[%s2508_s1 + $0x358] sm:$0xff] }
 0x123   : > { %1513 = vmatmul.msk.f32.gmra.mxu1 %vm229_vm7, %v228_v36  ;;  %v440_v36 = vld [vmem:[%s2508_s1 + $0xb0] sm:$0xff]  ;;  %vm996_vm7 = vcmask 15360  }
 0x124   : > { %470 = vmatpush.msrb.mxu0 %v440_v36  ;;  %v727_v36 = vld [vmem:[%s2508_s1 + $0x3e0] sm:$0xff] }
 0x198   : > { %v1661_v37 = vpop.f32.mrf.mxu1 }
 0x199   : > { %v263_v38 = vrot.slane %v1661_v37, 1  ;;  %v274_v42 = vrot.slane %v1661_v37, 3  ;;  %v268_v43 = vrot.slane %v1661_v37, 2 }
 0x19b   : > { %264 = vrot.lane.b32.xlu0 %v263_v38, %s1594_s17  ;;  %s1598_s17 = smov 32  }
 0x1a0   : > { %v1667_v39 = vpop.f32.mrf.mxu1 }
 0x1a1   : > { %v269_v40 = vrot.slane %v1667_v39, 2  ;;  %v275_v41 = vrot.slane %v1667_v39, 3 }
 0x1a3   : > { %v276_v44 = vsel %vm172_vm0, %v274_v42, %v275_v41  ;;  %v270_v45 = vsel %vm160_vm2, %v268_v43, %v269_v40  ;;  %v439_v40 = vld [vmem:[%s2508_s1 + $0xa8] sm:$0xff]  ;;  %vm481_vm0 = vcmask 1040384   ;;  %vm477_vm2 = vcmask 7168  }
 0x1a4   : > { %277 = vrot.lane.b32.xlu2 %v276_v44, %s1595_s28  ;;  %271 = vrot.lane.b32.xlu1 %v270_v45, %s1596_s29 }
 0x1a5   : > { %471 = vmatpush.msrb.mxu0 %v439_v40  ;;  %v647_v40 = vld [vmem:[%s2508_s1 + $0x2d8] sm:$0xff] }
 0x1fe   : > { %v278_v53 = vpop.permute.xlu2 %277 }
 0x20d   : > { %v265_v50 = vpop.permute.xlu0 %264 }
 0x20e   : > { %v280_v51 = vsel %vm187_vm4, %v1661_v37, %v265_v50 }
 0x216   : > { %v272_v52 = vpop.permute.xlu1 %271 }
 0x217   : > { %v281_v54 = vsel %vm197_vm6, %v280_v51, %v272_v52  ;;  %v476_v52 = vld [vmem:[%s2508_s1 + $0x130] sm:$0x7] }
 0x218   : > { %v283_v55 = vsel %vm282_vm8, %v281_v54, %v278_v53  ;;  %v533_v53 = vld [vmem:[%s2508_s1 + $0x1e0] sm:$0xff]  ;;  %v532_v54 = vld [vmem:[%s2508_s1 + $0x1d8] sm:$0xff] }
 0x219   : > { %1514 = vmatmul.msk.f32.vlgmr.msra.gmra.mxu2 %vm290_vm9, %v283_v55  ;;  %v531_v55 = vld [vmem:[%s2508_s1 + $0x1d0] sm:$0xff] }
 0x29c   : > { %v311_v57 = vpop.f32.mrf.mxu2 }
 0x29d   : > { %v312_v58 = vadd.f32 %v1578_v56, %v311_v57  ;;  %v530_v56 = vld [vmem:[%s2508_s1 + $0x1c8] sm:$0xff]  ;;  %v529_v57 = vld [vmem:[%s2508_s1 + $0x1c0] sm:$0xff] }
 0x29f   : > { %1515 = vmatpush.msk.msra.mxu3 %vm149_vm1, %v312_v58  ;;  %v528_v58 = vld [vmem:[%s2508_s1 + $0x1b8] sm:$0xff] }
 0x2a0   : > { %1516 = vmatmul.msk.f32.vlgmr.msra.gmra.mxu3 %vm315_vm10, %v314_v59  ;;  %vm1064_vm10 = vcmask 654336  }
 0x2a1   : > { %381 = vmatpush.msrb.mxu3 %v366_v0 }
 0x2a3   : > { %382 = vmatpush.msrb.mxu3 %v365_v1  ;;  %v527_v1 = vld [vmem:[%s2508_s1 + $0x1b0] sm:$0xff] }
 0x2a5   : > { %383 = vmatpush.msrb.mxu3 %v364_v2  ;;  %v526_v2 = vld [vmem:[%s2508_s1 + $0x1a8] sm:$0xff] }
 0x2a7   : > { %384 = vmatpush.msrb.mxu3 %v363_v3  ;;  %v525_v3 = vld [vmem:[%s2508_s1 + $0x1a0] sm:$0xff] }
 0x2a9   : > { %385 = vmatpush.msrb.mxu3 %v362_v4  ;;  %v524_v4 = vld [vmem:[%s2508_s1 + $0x198] sm:$0xff] }
 0x2ab   : > { %386 = vmatpush.msrb.mxu3 %v361_v5  ;;  %v523_v5 = vld [vmem:[%s2508_s1 + $0x190] sm:$0xff] }
 0x2ad   : > { %387 = vmatpush.msrb.mxu3 %v360_v6  ;;  %v522_v6 = vld [vmem:[%s2508_s1 + $0x188] sm:$0xff] }
 0x2af   : > { %388 = vmatpush.msrb.mxu3 %v359_v7 }
 0x2b1   : > { %567 = vmatpush.msra.mxu3 %v535_v47  ;;  %v645_v47 = vld [vmem:[%s2508_s1 + $0x2c8] sm:$0xff] }
 0x2b3   : > { %568 = vmatpush.msra.mxu3 %v534_v48  ;;  %v707_v48 = vld [vmem:[%s2508_s1 + $0x340] sm:$0xff] }
 0x2b5   : > { %569 = vmatpush.msra.mxu3 %v533_v53  ;;  %v643_v53 = vld [vmem:[%s2508_s1 + $0x2b8] sm:$0xff] }
 0x2b7   : > { %570 = vmatpush.msra.mxu3 %v532_v54  ;;  %v705_v54 = vld [vmem:[%s2508_s1 + $0x330] sm:$0xff] }
 0x2b9   : > { %571 = vmatpush.msra.mxu3 %v531_v55  ;;  %v722_v55 = vld [vmem:[%s2508_s1 + $0x3b8] sm:$0xff] }
 0x2bb   : > { %572 = vmatpush.msra.mxu3 %v530_v56  ;;  %v642_v56 = vld [vmem:[%s2508_s1 + $0x2b0] sm:$0xff] }
 0x2bd   : > { %573 = vmatpush.msra.mxu3 %v529_v57  ;;  %v704_v57 = vld [vmem:[%s2508_s1 + $0x328] sm:$0xff] }
 0x2bf   : > { %574 = vmatpush.msra.mxu3 %v528_v58  ;;  %v721_v58 = vld [vmem:[%s2508_s1 + $0x3b0] sm:$0xff] }
 0x323   : > { %v1701_v60 = vpop.f32.mrf.mxu3 }
 0x324   : > { %v351_v61 = vrot.slane %v1701_v60, 3  ;;  %v347_v62 = vrot.slane %v1701_v60, 2  ;;  %v343_v63 = vrot.slane %v1701_v60, 1 }
 0x326   : > { %352 = vrot.lane.b32.xlu2 %v351_v61, %s1597_s16  ;;  %348 = vrot.lane.b32.xlu1 %v347_v62, %s1598_s17 }
 0x327   : > { %344 = vrot.lane.b32.xlu0 %v343_v63, %s1596_s29 }
 0x380   : > { %v353_v11 = vpop.permute.xlu2 %352 }
 0x398   : > { %v349_v8 = vpop.permute.xlu1 %348 }
 0x399   : > { %v345_v9 = vpop.permute.xlu0 %344 }
 0x39a   : > { %v355_v10 = vsel %vm197_vm6, %v1701_v60, %v345_v9  ;;  %v521_v9 = vld [vmem:[%s2508_s1 + $0x180] sm:$0xff] }
 0x39b   : > { %v356_v12 = vsel %vm290_vm9, %v355_v10, %v349_v8  ;;  %v1058_v8 = vrot.slane %v1701_v60, 7  ;;  %v520_v10 = vld [vmem:[%s2508_s1 + $0x178] sm:$0xff] }
 0x39c   : > { %v358_v13 = vsel %vm357_vm11, %v356_v12, %v353_v11  ;;  %v519_v11 = vld [vmem:[%s2508_s1 + $0x170] sm:$0xff]  ;;  %v518_v12 = vld [vmem:[%s2508_s1 + $0x168] sm:$0xff] }
 0x39d   : > { %1517 = vmatmul.msk.f32.vlgmr.msrb.gmra.mxu3 %vm369_vm12, %v358_v13  ;;  %v517_v13 = vld [vmem:[%s2508_s1 + $0x160] sm:$0xff] }
 0x420   : > { %v390_v15 = vpop.f32.mrf.mxu3 }
 0x421   : > { %v391_v16 = vadd.f32 %v1579_v14, %v390_v15  ;;  %v516_v14 = vld [vmem:[%s2508_s1 + $0x158] sm:$0xff]  ;;  %v515_v15 = vld [vmem:[%s2508_s1 + $0x150] sm:$0xff] }
 0x423   : > { %1518 = vmatpush.msk.msrb.mxu2 %vm398_vm13, %v391_v16  ;;  %v514_v16 = vld [vmem:[%s2508_s1 + $0x148] sm:$0xff] }
 0x424   : > { %1519 = vmatmul.msk.f32.vlgmr.msrb.gmra.mxu2 %vm394_vm14, %v393_v17  ;;  %v513_v17 = vld [vmem:[%s2508_s1 + $0x140] sm:$0xff] }
 0x425   : > { %539 = vmatpush.msra.mxu2 %v527_v1 }
 0x427   : > { %540 = vmatpush.msra.mxu2 %v526_v2 }
 0x429   : > { %541 = vmatpush.msra.mxu2 %v525_v3  ;;  %v640_v3 = vld [vmem:[%s2508_s1 + $0x2a0] sm:$0xff] }
 0x42b   : > { %542 = vmatpush.msra.mxu2 %v524_v4  ;;  %v702_v4 = vld [vmem:[%s2508_s1 + $0x318] sm:$0xff] }
 0x42d   : > { %543 = vmatpush.msra.mxu2 %v523_v5  ;;  %v719_v5 = vld [vmem:[%s2508_s1 + $0x3a0] sm:$0xff] }
 0x42f   : > { %544 = vmatpush.msra.mxu2 %v522_v6 }
 0x431   : > { %545 = vmatpush.msra.mxu2 %v521_v9  ;;  %v636_v9 = vld [vmem:[%s2508_s1 + $0x280] sm:$0xff] }
 0x433   : > { %546 = vmatpush.msra.mxu2 %v520_v10  ;;  %v635_v10 = vld [vmem:[%s2508_s1 + $0x278] sm:$0xff] }
 0x435   : > { %547 = vmatpush.msra.mxu2 %v519_v11  ;;  %v634_v11 = vld [vmem:[%s2508_s1 + $0x270] sm:$0xff] }
 0x437   : > { %548 = vmatpush.msra.mxu2 %v518_v12  ;;  %v633_v12 = vld [vmem:[%s2508_s1 + $0x268] sm:$0xff] }
 0x439   : > { %549 = vmatpush.msra.mxu2 %v517_v13  ;;  %v632_v13 = vld [vmem:[%s2508_s1 + $0x260] sm:$0xff] }
 0x43b   : > { %550 = vmatpush.msra.mxu2 %v516_v14  ;;  %v631_v14 = vld [vmem:[%s2508_s1 + $0x258] sm:$0xff] }
 0x43d   : > { %551 = vmatpush.msra.mxu2 %v515_v15  ;;  %v630_v15 = vld [vmem:[%s2508_s1 + $0x250] sm:$0xff] }
 0x43f   : > { %552 = vmatpush.msra.mxu2 %v514_v16  ;;  %v629_v16 = vld [vmem:[%s2508_s1 + $0x248] sm:$0xff] }
 0x441   : > { %553 = vmatpush.msra.mxu2 %v513_v17  ;;  %v628_v17 = vld [vmem:[%s2508_s1 + $0x240] sm:$0xff] }
 0x443   : > { %554 = vmatpush.msra.mxu2 %v512_v18  ;;  %v627_v18 = vld [vmem:[%s2508_s1 + $0x238] sm:$0xff] }
 0x445   : > { %755 = vmatpush.msrb.mxu2 %v731_v24  ;;  %v622_v24 = vld [vmem:[%s2508_s1 + $0x210] sm:$0xff] }
 0x447   : > { %756 = vmatpush.msrb.mxu2 %v730_v27  ;;  %v718_v27 = vld [vmem:[%s2508_s1 + $0x398] sm:$0xff] }
 0x449   : > { %757 = vmatpush.msrb.mxu2 %v729_v30  ;;  %v700_v30 = vld [vmem:[%s2508_s1 + $0x308] sm:$0xff] }
 0x44b   : > { %758 = vmatpush.msrb.mxu2 %v728_v33  ;;  %v716_v33 = vld [vmem:[%s2508_s1 + $0x388] sm:$0xff] }
 0x44d   : > { %759 = vmatpush.msrb.mxu2 %v727_v36 }
 0x4a7   : > { %v1752_v20 = vpop.f32.mrf.mxu2 }
 0x4a8   : > { %v431_v21 = vrot.slane %v1752_v20, 3  ;;  %v427_v22 = vrot.slane %v1752_v20, 2  ;;  %v423_v23 = vrot.slane %v1752_v20, 1  ;;  %v837_v7 = vrot.slane %v1752_v20, 7 }
 0x4aa   : > { %432 = vrot.lane.b32.xlu2 %v431_v21, %s1599_s20  ;;  %428 = vrot.lane.b32.xlu1 %v427_v22, %s1600_s21  ;;  %v715_v21 = vld [vmem:[%s2508_s1 + $0x380] sm:$0xff] }
 0x4ab   : > { %424 = vrot.lane.b32.xlu0 %v423_v23, %s1598_s17  ;;  %735 = vmatpush.msra.mxu0 %v715_v21  ;;  %v652_v22 = vld [vmem:[%s2508_s1 + $0x300] sm:$0xff]  ;;  %v714_v23 = vld [vmem:[%s2508_s1 + $0x378] sm:$0xff]  ;;  %v625_v21 = vld [vmem:[%s2508_s1 + $0x228] sm:$0xff] }
 0x4ac   : > { %680 = vmatpush.msrb.mxu3 %v652_v22  ;;  %v624_v22 = vld [vmem:[%s2508_s1 + $0x220] sm:$0xff] }
 0x4ad   : > { %736 = vmatpush.msra.mxu0 %v714_v23  ;;  %v623_v23 = vld [vmem:[%s2508_s1 + $0x218] sm:$0xff] }
 0x4ae   : > { %681 = vmatpush.msrb.mxu3 %v651_v25  ;;  %v639_v25 = vld [vmem:[%s2508_s1 + $0x298] sm:$0xff] }
 0x4af   : > { %737 = vmatpush.msra.mxu0 %v713_v26  ;;  %v701_v26 = vld [vmem:[%s2508_s1 + $0x310] sm:$0xff] }
 0x4b0   : > { %682 = vmatpush.msrb.mxu3 %v650_v28  ;;  %v621_v28 = vld [vmem:[%s2508_s1 + $0x208] sm:$0xff] }
 0x4b1   : > { %738 = vmatpush.msra.mxu0 %v712_v29  ;;  %v638_v29 = vld [vmem:[%s2508_s1 + $0x290] sm:$0xff] }
 0x4b2   : > { %683 = vmatpush.msrb.mxu3 %v649_v31  ;;  %v717_v31 = vld [vmem:[%s2508_s1 + $0x390] sm:$0xff] }
 0x4b3   : > { %739 = vmatpush.msra.mxu0 %v711_v32  ;;  %v637_v32 = vld [vmem:[%s2508_s1 + $0x288] sm:$0xff] }
 0x4b4   : > { %684 = vmatpush.msrb.mxu3 %v648_v34 }
 0x4b5   : > { %740 = vmatpush.msra.mxu0 %v710_v35 }
 0x4b6   : > { %685 = vmatpush.msrb.mxu3 %v647_v40 }
 0x504   : > { %v433_v44 = vpop.permute.xlu2 %432 }
 0x51c   : > { %v429_v41 = vpop.permute.xlu1 %428 }
 0x51d   : > { %v1802_v42 = vpop.permute.xlu0 %424 }
 0x51e   : > { %v435_v43 = vsel %vm290_vm9, %v1752_v20, %v1802_v42 }
 0x51f   : > { %v436_v45 = vsel %vm369_vm12, %v435_v43, %v429_v41  ;;  %v709_v41 = vld [vmem:[%s2508_s1 + $0x350] sm:$0xff]  ;;  %v726_v43 = vld [vmem:[%s2508_s1 + $0x3d8] sm:$0xff] }
 0x520   : > { %v438_v46 = vsel %vm437_vm15, %v436_v45, %v433_v44  ;;  %741 = vmatpush.msra.mxu0 %v709_v41  ;;  %760 = vmatpush.msrb.mxu2 %v726_v43  ;;  %v646_v44 = vld [vmem:[%s2508_s1 + $0x2d0] sm:$0xff]  ;;  %v708_v45 = vld [vmem:[%s2508_s1 + $0x348] sm:$0xff] }
 0x521   : > { %472 = vmatmul.f32.vlgmr.msrb.gmra.mxu0 %v438_v46  ;;  %v725_v46 = vld [vmem:[%s2508_s1 + $0x3d0] sm:$0xff]  ;;  %686 = vmatpush.msrb.mxu3 %v646_v44 }
 0x522   : > { %742 = vmatpush.msra.mxu0 %v708_v45  ;;  %761 = vmatpush.msrb.mxu2 %v725_v46 }
 0x523   : > { %687 = vmatpush.msrb.mxu3 %v645_v47 }
 0x524   : > { %743 = vmatpush.msra.mxu0 %v707_v48 }
 0x59e   : > { %v473_v50 = vpop.f32.mrf.mxu0 }
 0x59f   : > { %v474_v51 = vadd.f32 %v473_v50, %v455_v49  ;;  %v724_v49 = vld [vmem:[%s2508_s1 + $0x3c8] sm:$0xff]  ;;  %v644_v50 = vld [vmem:[%s2508_s1 + $0x2c0] sm:$0xff] }
 0x5a0   : > { %762 = vmatpush.msrb.mxu2 %v724_v49  ;;  %688 = vmatpush.msrb.mxu3 %v644_v50  ;;  %v653_v49 = vld [vmem:[%s2508_s1 + $0x408] sm:$0x1] }
 0x5a1   : > { %1520 = vmatpush.msk.msrb.mxu1 %vm481_vm0, %v474_v51  ;;  %v706_v51 = vld [vmem:[%s2508_s1 + $0x338] sm:$0xff] }
 0x5a2   : > { %1521 = vmatmul.msk.f32.vlgmr.msrb.gmra.mxu1 %vm477_vm2, %v476_v52  ;;  %v723_v52 = vld [vmem:[%s2508_s1 + $0x3c0] sm:$0xff]  ;;  %744 = vmatpush.msra.mxu0 %v706_v51 }
 0x5a3   : > { %763 = vmatpush.msrb.mxu2 %v723_v52  ;;  %689 = vmatpush.msrb.mxu3 %v643_v53 }
 0x5a4   : > { %745 = vmatpush.msra.mxu0 %v705_v54 }
 0x5a5   : > { %764 = vmatpush.msrb.mxu2 %v722_v55  ;;  %690 = vmatpush.msrb.mxu3 %v642_v56 }
 0x5a6   : > { %746 = vmatpush.msra.mxu0 %v704_v57 }
 0x5a7   : > { %765 = vmatpush.msrb.mxu2 %v721_v58  ;;  %v776_v58 = vld [vmem:[%s2508_s1 + $0x418] sm:$0xf] }
 0x61f   : > { %v502_v59 = vpop.f32.mrf.mxu1 }
 0x620   : > { %v510_v61 = vrot.slane %v502_v59, 2  ;;  %v506_v62 = vrot.slane %v502_v59, 1  ;;  %606 = vrot.lane.b32.xlu2 %v502_v59, %s1600_s21  ;;  %v612_v0 = vrot.slane %v502_v59, 7 }
 0x622   : > { %507 = vrot.lane.b32.xlu0 %v506_v62, %s1600_s21  ;;  %613 = vrot.lane.b32.xlu1 %v612_v0, %s1600_s21  ;;  %v703_v62 = vld [vmem:[%s2508_s1 + $0x320] sm:$0xff]  ;;  %v720_v0 = vld [vmem:[%s2508_s1 + $0x3a8] sm:$0xff] }
 0x623   : > { %1522 = vmatmul.msk.f32.vlgmr.msra.gmra.mxu3 %vm369_vm12, %v510_v61  ;;  %v641_v61 = vld [vmem:[%s2508_s1 + $0x2a8] sm:$0xff]  ;;  %747 = vmatpush.msra.mxu0 %v703_v62 }
 0x624   : > { %691 = vmatpush.msrb.mxu3 %v641_v61  ;;  %766 = vmatpush.msrb.mxu2 %v720_v0  ;;  %v864_v61 = vld [vmem:[%s2508_s1 + $0x490] sm:$0xff]  ;;  %v863_v62 = vld [vmem:[%s2508_s1 + $0x488] sm:$0xff]  ;;  %v873_v0 = vld [vmem:[%s2508_s1 + $0x4d8] sm:$0xff] }
 0x625   : > { %748 = vmatpush.msra.mxu0 %v702_v4  ;;  %v861_v4 = vld [vmem:[%s2508_s1 + $0x478] sm:$0xff] }
 0x626   : > { %692 = vmatpush.msrb.mxu3 %v640_v3  ;;  %767 = vmatpush.msrb.mxu2 %v719_v5  ;;  %v871_v3 = vld [vmem:[%s2508_s1 + $0x4c8] sm:$0xff]  ;;  %v938_v5 = vld [vmem:[%s2508_s1 + $0x558] sm:$0xff] }
 0x627   : > { %749 = vmatpush.msra.mxu0 %v701_v26  ;;  %v867_v26 = vld [vmem:[%s2508_s1 + $0x4a8] sm:$0xff] }
 0x628   : > { %693 = vmatpush.msrb.mxu3 %v639_v25  ;;  %768 = vmatpush.msrb.mxu2 %v718_v27  ;;  %v851_v25 = vld [vmem:[%s2508_s1 + $0x428] sm:$0xff] }
 0x629   : > { %750 = vmatpush.msra.mxu0 %v700_v30  ;;  %v936_v27 = vld [vmem:[%s2508_s1 + $0x548] sm:$0xff]  ;;  %v935_v30 = vld [vmem:[%s2508_s1 + $0x540] sm:$0xff] }
 0x62a   : > { %829 = vrot.lane.b32.xlu0 %v1752_v20, %s1600_s21  ;;  %694 = vmatpush.msrb.mxu3 %v638_v29  ;;  %v866_v29 = vld [vmem:[%s2508_s1 + $0x4a0] sm:$0xff] }
 0x62b   : > { %769 = vmatpush.msrb.mxu2 %v717_v31  ;;  %v934_v31 = vld [vmem:[%s2508_s1 + $0x538] sm:$0xff] }
 0x62c   : > { %695 = vmatpush.msrb.mxu3 %v637_v32  ;;  %v946_v32 = vld [vmem:[%s2508_s1 + $0x598] sm:$0xff] }
 0x62d   : > { %770 = vmatpush.msrb.mxu2 %v716_v33  ;;  %v933_v33 = vld [vmem:[%s2508_s1 + $0x530] sm:$0xff] }
 0x632   : > { %838 = vrot.lane.b32.xlu0 %v837_v7, %s1598_s17 }
 0x63a   : > { %1059 = vrot.lane.b32.xlu0 %v1058_v8, %s1601_s22  ;;  %v579_v8 = vld [vmem:[%s2508_s1 + $0x200] sm:$0x7] }
 0x642   : > { %1218 = vrot.lane.b32.xlu0 %v1661_v37, %s1596_s29 }
 0x67a   : > { %v607_v34 = vpop.permute.xlu2 %606 }
 0x694   : > { %v1901_v19 = vpop.permute.xlu0 %507  ;;  %v614_v43 = vpop.permute.xlu1 %613 }
 0x695   : > { %v511_v20 = vsel %vm369_vm12, %v502_v59, %v1901_v19  ;;  %v536_v59 = vld [vmem:[%s2508_s1 + $0x1f8] sm:$0x1] }
 0x696   : > { %555 = vmatmul.f32.vlgmr.msra.gmra.mxu2 %v511_v20  ;;  %v626_v20 = vld [vmem:[%s2508_s1 + $0x230] sm:$0xff] }
 0x697   : > { %982 = vmatpush.msra.mxu2 %v946_v32 }
 0x6a6   : > { %v576_v6 = vpop.f32.mrf.mxu3 }
 0x719   : > { %v556_v1 = vpop.f32.mrf.mxu2 }
 0x71a   : > { %v557_v2 = vadd.f32 %v556_v1, %v536_v59  ;;  %v865_v59 = vld [vmem:[%s2508_s1 + $0x498] sm:$0xff]  ;;  %v872_v1 = vld [vmem:[%s2508_s1 + $0x4d0] sm:$0xff] }
 0x71b   : > { %883 = vmatpush.msrb.mxu0 %v865_v59 }
 0x71c   : > { %v577_v7 = vadd.f32 %v576_v6, %v557_v2  ;;  %v862_v2 = vld [vmem:[%s2508_s1 + $0x480] sm:$0xff] }
 0x71d   : > { %884 = vmatpush.msrb.mxu0 %v864_v61  ;;  %v870_v6 = vld [vmem:[%s2508_s1 + $0x4c0] sm:$0xff] }
 0x71e   : > { %1523 = vmatpush.msk.msra.mxu1 %vm481_vm0, %v577_v7  ;;  %v937_v7 = vld [vmem:[%s2508_s1 + $0x550] sm:$0xff] }
 0x71f   : > { %1524 = vmatmul.msk.f32.vlgmr.msra.gmra.mxu1 %vm477_vm2, %v579_v8  ;;  %885 = vmatpush.msrb.mxu0 %v863_v62  ;;  %v860_v8 = vld [vmem:[%s2508_s1 + $0x470] sm:$0xff] }
 0x720   : > { %660 = vmatpush.msrb.mxu1 %v636_v9  ;;  %v869_v9 = vld [vmem:[%s2508_s1 + $0x4b8] sm:$0xff] }
 0x721   : > { %886 = vmatpush.msrb.mxu0 %v862_v2 }
 0x722   : > { %661 = vmatpush.msrb.mxu1 %v635_v10  ;;  %v859_v10 = vld [vmem:[%s2508_s1 + $0x468] sm:$0xff] }
 0x723   : > { %887 = vmatpush.msrb.mxu0 %v861_v4 }
 0x724   : > { %662 = vmatpush.msrb.mxu1 %v634_v11  ;;  %v868_v11 = vld [vmem:[%s2508_s1 + $0x4b0] sm:$0xff] }
 0x725   : > { %888 = vmatpush.msrb.mxu0 %v860_v8 }
 0x726   : > { %663 = vmatpush.msrb.mxu1 %v633_v12  ;;  %v858_v12 = vld [vmem:[%s2508_s1 + $0x460] sm:$0xff] }
 0x727   : > { %889 = vmatpush.msrb.mxu0 %v859_v10 }
 0x728   : > { %664 = vmatpush.msrb.mxu1 %v632_v13  ;;  %v857_v13 = vld [vmem:[%s2508_s1 + $0x458] sm:$0xff] }
 0x729   : > { %890 = vmatpush.msrb.mxu0 %v858_v12 }
 0x72a   : > { %665 = vmatpush.msrb.mxu1 %v631_v14  ;;  %v856_v14 = vld [vmem:[%s2508_s1 + $0x450] sm:$0xff] }
 0x72b   : > { %891 = vmatpush.msrb.mxu0 %v857_v13 }
 0x72c   : > { %666 = vmatpush.msrb.mxu1 %v630_v15 }
 0x72d   : > { %892 = vmatpush.msrb.mxu0 %v856_v14  ;;  %v994_v14 = vld [vmem:[%s2508_s1 + $0x5a8] sm:$0x3f] }
 0x72e   : > { %667 = vmatpush.msrb.mxu1 %v629_v16  ;;  %v855_v16 = vld [vmem:[%s2508_s1 + $0x448] sm:$0xff] }
 0x72f   : > { %893 = vmatpush.msrb.mxu0 %v855_v16  ;;  %v1086_v16 = vld [vmem:[%s2508_s1 + $0x610] sm:$0xff] }
 0x730   : > { %668 = vmatpush.msrb.mxu1 %v628_v17 }
 0x732   : > { %669 = vmatpush.msrb.mxu1 %v627_v18 }
 0x734   : > { %670 = vmatpush.msrb.mxu1 %v626_v20  ;;  %v854_v20 = vld [vmem:[%s2508_s1 + $0x440] sm:$0xff] }
 0x735   : > { %894 = vmatpush.msrb.mxu0 %v854_v20 }
 0x736   : > { %671 = vmatpush.msrb.mxu1 %v625_v21 }
 0x738   : > { %672 = vmatpush.msrb.mxu1 %v624_v22 }
 0x73a   : > { %673 = vmatpush.msrb.mxu1 %v623_v23  ;;  %v853_v23 = vld [vmem:[%s2508_s1 + $0x438] sm:$0xff] }
 0x73b   : > { %895 = vmatpush.msrb.mxu0 %v853_v23 }
 0x73c   : > { %674 = vmatpush.msrb.mxu1 %v622_v24  ;;  %v852_v24 = vld [vmem:[%s2508_s1 + $0x430] sm:$0xff] }
 0x73d   : > { %896 = vmatpush.msrb.mxu0 %v852_v24 }
 0x73e   : > { %675 = vmatpush.msrb.mxu1 %v621_v28  ;;  %v850_v28 = vld [vmem:[%s2508_s1 + $0x420] sm:$0xff] }
 0x73f   : > { %897 = vmatpush.msrb.mxu0 %v851_v25  ;;  %v1082_v25 = vld [vmem:[%s2508_s1 + $0x5f0] sm:$0xff] }
 0x741   : > { %898 = vmatpush.msrb.mxu0 %v850_v28  ;;  %v1079_v28 = vld [vmem:[%s2508_s1 + $0x5d8] sm:$0xff] }
 0x79c   : > { %v603_v35 = vpop.f32.mrf.mxu1 }
 0x79d   : > { %v610_v36 = vrot.slane %v603_v35, 7  ;;  %v616_v40 = vsel %vm369_vm12, %v603_v35, %v607_v34  ;;  %v618_v41 = vrot.slane %v603_v35, 1  ;;  %v945_v34 = vld [vmem:[%s2508_s1 + $0x590] sm:$0xff]  ;;  %v944_v35 = vld [vmem:[%s2508_s1 + $0x588] sm:$0xff] }
 0x79e   : > { %v656_v44 = vrot.slane %v616_v40, 1  ;;  %983 = vmatpush.msra.mxu2 %v945_v34  ;;  %v943_v40 = vld [vmem:[%s2508_s1 + $0x580] sm:$0xff] }
 0x79f   : > { %v617_v45 = vsel %vm369_vm12, %v610_v36, %v614_v43  ;;  %v620_v46 = vsel %vm369_vm12, %v618_v41, %v1901_v19  ;;  %v775_v19 = vld [vmem:[%s2508_s1 + $0x410] sm:$0xf]  ;;  %v932_v36 = vld [vmem:[%s2508_s1 + $0x528] sm:$0xff]  ;;  %v931_v41 = vld [vmem:[%s2508_s1 + $0x520] sm:$0xff] }
 0x7a0   : > { %676 = vmatmul.f32.vlgmr.msrb.gmra.mxu1 %v656_v44  ;;  %751 = vmatmul.f32.vlgmr.msra.gmra.mxu0 %v656_v44  ;;  %v657_v47 = vrot.slane %v617_v45, 1  ;;  %v733_v48 = vrot.slane %v620_v46, 1  ;;  %v942_v43 = vld [vmem:[%s2508_s1 + $0x578] sm:$0xff]  ;;  %v941_v45 = vld [vmem:[%s2508_s1 + $0x570] sm:$0xff]  ;;  %v1122_v34 = vld [vmem:[%s2508_s1 + $0x660] sm:$0xff] }
 0x7a1   : > { %984 = vmatpush.msra.mxu2 %v944_v35  ;;  %v930_v44 = vld [vmem:[%s2508_s1 + $0x518] sm:$0xff]  ;;  %v929_v46 = vld [vmem:[%s2508_s1 + $0x510] sm:$0xff] }
 0x7a2   : > { %696 = vmatmul.f32.vlgmr.msrb.gmra.mxu3 %v657_v47  ;;  %771 = vmatmul.f32.vlgmr.msrb.gmra.mxu2 %v733_v48  ;;  %v928_v47 = vld [vmem:[%s2508_s1 + $0x508] sm:$0xff]  ;;  %v927_v48 = vld [vmem:[%s2508_s1 + $0x500] sm:$0xff]  ;;  %v1121_v35 = vld [vmem:[%s2508_s1 + $0x658] sm:$0xff] }
 0x7a3   : > { %985 = vmatpush.msra.mxu2 %v943_v40  ;;  %v1119_v40 = vld [vmem:[%s2508_s1 + $0x648] sm:$0xff] }
 0x7a5   : > { %986 = vmatpush.msra.mxu2 %v942_v43  ;;  %v1117_v43 = vld [vmem:[%s2508_s1 + $0x638] sm:$0xff] }
 0x7a7   : > { %987 = vmatpush.msra.mxu2 %v941_v45  ;;  %v1115_v45 = vld [vmem:[%s2508_s1 + $0x628] sm:$0xff] }
 0x81d   : > { %v677_v50 = vpop.f32.mrf.mxu1  ;;  %v752_v51 = vpop.f32.mrf.mxu0 }
 0x81e   : > { %v678_v52 = vadd.f32 %v677_v50, %v653_v49  ;;  %v753_v53 = vadd.f32 %v752_v51, %v653_v49  ;;  %v926_v49 = vld [vmem:[%s2508_s1 + $0x4f8] sm:$0xff]  ;;  %v830_v50 = vpop.permute.xlu0 %829  ;;  %v925_v51 = vld [vmem:[%s2508_s1 + $0x4f0] sm:$0xff] }
 0x825   : > { %v697_v54 = vpop.f32.mrf.mxu3  ;;  %v772_v55 = vpop.f32.mrf.mxu2 }
 0x826   : > { %v698_v56 = vadd.f32 %v697_v54, %v678_v52  ;;  %v773_v57 = vadd.f32 %v772_v55, %v753_v53  ;;  %v924_v52 = vld [vmem:[%s2508_s1 + $0x4e8] sm:$0xff]  ;;  %v923_v54 = vld [vmem:[%s2508_s1 + $0x4e0] sm:$0xff] }
 0x827   : > { %v940_v53 = vld [vmem:[%s2508_s1 + $0x568] sm:$0xff]  ;;  %v939_v55 = vld [vmem:[%s2508_s1 + $0x560] sm:$0xff] }
 0x828   : > { %1525 = vmatpush.msk.msra.mxu1 %vm481_vm0, %v773_v57  ;;  %1527 = vmatpush.msk.msra.mxu3 %vm481_vm0, %v698_v56  ;;  %v839_v56 = vpop.permute.xlu0 %838 }
 0x829   : > { %1528 = vmatmul.msk.f32.vlgmr.msra.gmra.mxu3 %vm477_vm2, %v775_v19  ;;  %1526 = vmatmul.msk.f32.vlgmr.msra.gmra.mxu1 %vm477_vm2, %v776_v58 }
 0x82a   : > { %911 = vmatpush.msrb.mxu1 %v873_v0  ;;  %954 = vmatpush.msrb.mxu3 %v938_v5  ;;  %v1580_v5 = vld [vmem:[%s2508_s1 + $0x5a0] ss:$0 sm:$0xff] }
 0x82b   : > { %988 = vmatpush.msra.mxu2 %v940_v53 }
 0x82c   : > { %912 = vmatpush.msrb.mxu1 %v872_v1  ;;  %955 = vmatpush.msrb.mxu3 %v937_v7 }
 0x82d   : > { %989 = vmatpush.msra.mxu2 %v939_v55 }
 0x82e   : > { %913 = vmatpush.msrb.mxu1 %v871_v3  ;;  %956 = vmatpush.msrb.mxu3 %v936_v27  ;;  %v1080_v27 = vld [vmem:[%s2508_s1 + $0x5e0] sm:$0xff] }
 0x82f   : > { %1097 = vmatpush.msrb.mxu2 %v1086_v16  ;;  %v1301_v16 = vld [vmem:[%s2508_s1 + $0x6f0] sm:$0xff] }
 0x830   : > { %914 = vmatpush.msrb.mxu1 %v870_v6  ;;  %957 = vmatpush.msrb.mxu3 %v935_v30  ;;  %v1077_v30 = vld [vmem:[%s2508_s1 + $0x5c8] sm:$0xff] }
 0x832   : > { %915 = vmatpush.msrb.mxu1 %v869_v9  ;;  %958 = vmatpush.msrb.mxu3 %v934_v31  ;;  %v1250_v31 = vrot.slane %v1667_v39, 1 }
 0x834   : > { %916 = vmatpush.msrb.mxu1 %v868_v11  ;;  %959 = vmatpush.msrb.mxu3 %v933_v33  ;;  %v1251_v32 = vsel %vm149_vm1, %v263_v38, %v1250_v31  ;;  %v1075_v33 = vld [vmem:[%s2508_s1 + $0x5b8] sm:$0xff]  ;;  %v1124_v38 = vld [vmem:[%s2508_s1 + $0x670] sm:$0xff] }
 0x835   : > { %1133 = vmatpush.msra.mxu0 %v1124_v38 }
 0x836   : > { %917 = vmatpush.msrb.mxu1 %v867_v26  ;;  %960 = vmatpush.msrb.mxu3 %v932_v36  ;;  %v1081_v26 = vld [vmem:[%s2508_s1 + $0x5e8] sm:$0xff]  ;;  %v1120_v36 = vld [vmem:[%s2508_s1 + $0x650] sm:$0xff] }
 0x838   : > { %918 = vmatpush.msrb.mxu1 %v866_v29  ;;  %961 = vmatpush.msrb.mxu3 %v931_v41  ;;  %v1078_v29 = vld [vmem:[%s2508_s1 + $0x5d0] sm:$0xff]  ;;  %v1118_v41 = vld [vmem:[%s2508_s1 + $0x640] sm:$0xff] }
 0x83a   : > { %962 = vmatpush.msrb.mxu3 %v930_v44  ;;  %v1116_v44 = vld [vmem:[%s2508_s1 + $0x630] sm:$0xff] }
 0x83c   : > { %963 = vmatpush.msrb.mxu3 %v929_v46  ;;  %v1114_v46 = vld [vmem:[%s2508_s1 + $0x620] sm:$0xff] }
 0x83e   : > { %964 = vmatpush.msrb.mxu3 %v928_v47  ;;  %v1113_v47 = vld [vmem:[%s2508_s1 + $0x618] sm:$0xff] }
 0x840   : > { %965 = vmatpush.msrb.mxu3 %v927_v48 }
 0x842   : > { %966 = vmatpush.msrb.mxu3 %v926_v49 }
 0x844   : > { %967 = vmatpush.msrb.mxu3 %v925_v51  ;;  %v1060_v51 = vpop.permute.xlu0 %1059 }
 0x846   : > { %968 = vmatpush.msrb.mxu3 %v924_v52 }
 0x848   : > { %969 = vmatpush.msrb.mxu3 %v923_v54 }
 0x8a6   : > { %v800_v15 = vpop.f32.mrf.mxu1 }
 0x8ac   : > { %v826_v17 = vpop.f32.mrf.mxu3 }
 0x8ad   : > { %v2179_v18 = vadd.f32 %v826_v17, %v800_v15  ;;  %v1085_v17 = vld [vmem:[%s2508_s1 + $0x608] sm:$0xff] }
 0x8ae   : > { %1098 = vmatpush.msrb.mxu2 %v1085_v17  ;;  %v1300_v17 = vld [vmem:[%s2508_s1 + $0x6e8] sm:$0xff] }
 0x8af   : > { %v844_v21 = vrot.slane %v2179_v18, 1  ;;  %v833_v22 = vrot.slane %v2179_v18, 7  ;;  %v841_v19 = vsel %vm369_vm12, %v2179_v18, %v830_v50  ;;  %v1084_v18 = vld [vmem:[%s2508_s1 + $0x600] sm:$0xff] }
 0x8b0   : > { %1099 = vmatpush.msrb.mxu2 %v1084_v18  ;;  %v1267_v18 = vld [vmem:[%s2508_s1 + $0x6c8] sm:$0xff] }
 0x8b1   : > { %845 = vrot.lane.b32.xlu1 %v844_v21, %s1599_s20  ;;  %834 = vrot.lane.b32.xlu2 %v833_v22, %s1599_s20  ;;  %v1083_v22 = vld [vmem:[%s2508_s1 + $0x5f8] sm:$0xff] }
 0x8b2   : > { %1100 = vmatpush.msrb.mxu2 %v1083_v22  ;;  %v1297_v22 = vld [vmem:[%s2508_s1 + $0x6d0] sm:$0xff] }
 0x8b4   : > { %1101 = vmatpush.msrb.mxu2 %v1082_v25  ;;  %v1263_v25 = vld [vmem:[%s2508_s1 + $0x6a8] sm:$0xff] }
 0x8b6   : > { %1102 = vmatpush.msrb.mxu2 %v1081_v26  ;;  %v1262_v26 = vld [vmem:[%s2508_s1 + $0x6a0] sm:$0xff] }
 0x8b8   : > { %1103 = vmatpush.msrb.mxu2 %v1080_v27 }
 0x8b9   : > { %1050 = vrot.lane.b32.xlu1 %v1701_v60, %s1598_s17  ;;  %v1229_v60 = vrot.slane %v1661_v37, 7  ;;  %v1123_v37 = vld [vmem:[%s2508_s1 + $0x668] sm:$0xff] }
 0x8ba   : > { %1104 = vmatpush.msrb.mxu2 %v1079_v28  ;;  %1134 = vmatpush.msra.mxu0 %v1123_v37 }
 0x8bc   : > { %1105 = vmatpush.msrb.mxu2 %v1078_v29  ;;  %1135 = vmatpush.msra.mxu0 %v1122_v34  ;;  %v1219_v29 = vpop.permute.xlu0 %1218 }
 0x8be   : > { %1106 = vmatpush.msrb.mxu2 %v1077_v30  ;;  %1136 = vmatpush.msra.mxu0 %v1121_v35 }
 0x8c0   : > { %1137 = vmatpush.msra.mxu0 %v1120_v36 }
 0x8c2   : > { %1138 = vmatpush.msra.mxu0 %v1119_v40 }
 0x8c4   : > { %1139 = vmatpush.msra.mxu0 %v1118_v41 }
 0x8c6   : > { %1140 = vmatpush.msra.mxu0 %v1117_v43 }
 0x8c8   : > { %1141 = vmatpush.msra.mxu0 %v1116_v44 }
 0x8ca   : > { %1142 = vmatpush.msra.mxu0 %v1115_v45 }
 0x8cc   : > { %1143 = vmatpush.msra.mxu0 %v1114_v46 }
 0x8ce   : > { %1144 = vmatpush.msra.mxu0 %v1113_v47 }
 0x90b   : > { %v835_v57 = vpop.permute.xlu2 %834 }
 0x90c   : > { %v842_v58 = vsel %vm437_vm15, %v841_v19, %v835_v57  ;;  %v843_v59 = vsel %vm290_vm9, %v835_v57, %v839_v56 }
 0x90d   : > { %v878_v61 = vrot.slane %v842_v58, 1  ;;  %v879_v62 = vrot.slane %v843_v59, 1  ;;  %v1581_v59 = vld [vmem:[%s2508_s1 + $0x678] ss:$0 sm:$0xff] }
 0x90f   : > { %899 = vmatmul.f32.vlgmr.msrb.gmra.mxu0 %v878_v61  ;;  %1529 = vmatmul.msk.f32.vlgmr.msrb.gmra.mxu1 %vm369_vm12, %v879_v62 }
 0x923   : > { %v846_v0 = vpop.permute.xlu1 %845 }
 0x924   : > { %v848_v1 = vsel %vm437_vm15, %v841_v19, %v846_v0  ;;  %v849_v2 = vsel %vm290_vm9, %v846_v0, %v1802_v42  ;;  %v995_v42 = vld [vmem:[%s2508_s1 + $0x5b0] sm:$0x3f]  ;;  %v1149_v0 = vld [vmem:[%s2508_s1 + $0x680] sm:$0xff] }
 0x925   : > { %v949_v3 = vrot.slane %v848_v1, 1  ;;  %v950_v4 = vrot.slane %v849_v2, 1  ;;  %v1150_v1 = vld [vmem:[%s2508_s1 + $0x688] sm:$0x3] }
 0x927   : > { %970 = vmatmul.f32.vlgmr.msrb.gmra.mxu3 %v949_v3  ;;  %1530 = vmatmul.msk.f32.vlgmr.msra.gmra.mxu2 %vm369_vm12, %v950_v4  ;;  %v1151_v4 = vld [vmem:[%s2508_s1 + $0x690] sm:$0xff]  ;;  %vm1237_vm12 = vcmask 326656  }
 0x92b   : > { %v1051_v48 = vpop.permute.xlu1 %1050 }
 0x98c   : > { %v900_v6 = vpop.f32.mrf.mxu0  ;;  %v920_v12 = vpop.f32.mrf.mxu1 }
 0x98d   : > { %v901_v8 = vadd.f32 %v1580_v5, %v900_v6 }
 0x98f   : > { %v921_v13 = vadd.f32 %v920_v12, %v901_v8 }
 0x9aa   : > { %v971_v7 = vpop.f32.mrf.mxu3  ;;  %v991_v10 = vpop.f32.mrf.mxu2 }
 0x9ab   : > { %v972_v9 = vadd.f32 %v1580_v5, %v971_v7  ;;  %v1152_v5 = vld [vmem:[%s2508_s1 + $0x698] sm:$0x3] }
 0x9ad   : > { %v992_v11 = vadd.f32 %v991_v10, %v972_v9 }
 0x9af   : > { %1531 = vmatpush.msk.msra.mxu1 %vm1000_vm5, %v992_v11 }
 0x9b0   : > { %1532 = vmatmul.msk.f32.vlgmr.msra.gmra.mxu1 %vm996_vm7, %v995_v42 }
 0x9b1   : > { %1533 = vmatpush.msk.msrb.mxu1 %vm1000_vm5, %v921_v13 }
 0x9b8   : > { %1534 = vmatmul.msk.f32.vlgmr.msrb.gmra.mxu1 %vm996_vm7, %v994_v14 }
 0xa2d   : > { %v1021_v15 = vpop.f32.mrf.mxu1 }
 0xa35   : > { %v1047_v20 = vpop.f32.mrf.mxu1 }
 0xa36   : > { %v1048_v21 = vadd.f32 %v1047_v20, %v1021_v15  ;;  %v1302_v15 = vld [vmem:[%s2508_s1 + $0x6f8] sm:$0xff] }
 0xa37   : > { %v1298_v20 = vld [vmem:[%s2508_s1 + $0x6d8] sm:$0xff] }
 0xa38   : > { %v1066_v23 = vrot.slane %v1048_v21, 1  ;;  %v1054_v24 = vrot.slane %v1048_v21, 7  ;;  %v1062_v49 = vsel %vm290_vm9, %v1048_v21, %v1051_v48  ;;  %vm1159_vm9 = vcmask 1043456   ;;  %v1266_v21 = vld [vmem:[%s2508_s1 + $0x6c0] sm:$0xff] }
 0xa3a   : > { %1067 = vrot.lane.b32.xlu1 %v1066_v23, %s1597_s16  ;;  %1055 = vrot.lane.b32.xlu2 %v1054_v24, %s1597_s16  ;;  %v1265_v23 = vld [vmem:[%s2508_s1 + $0x6b8] sm:$0xff]  ;;  %v1264_v24 = vld [vmem:[%s2508_s1 + $0x6b0] sm:$0xff] }
 0xa42   : > { %1220 = vrot.lane.b32.xlu1 %v1667_v39, %s1596_s29  ;;  %1070 = vrot.lane.b32.xlu2 %v343_v63, %s1601_s22  ;;  %v1076_v63 = vld [vmem:[%s2508_s1 + $0x5c0] sm:$0xff] }
 0xa43   : > { %1107 = vmatpush.msrb.mxu2 %v1076_v63  ;;  %v1299_v39 = vld [vmem:[%s2508_s1 + $0x6e0] sm:$0xff] }
 0xa45   : > { %1108 = vmatpush.msrb.mxu2 %v1075_v33 }
 0xa4a   : > { %1252 = vrot.lane.b32.xlu1 %v1251_v32, %s1602_s7 }
 0xa52   : > { %1230 = vrot.lane.b32.xlu1 %v1229_v60, %s1602_s7 }
 0xa94   : > { %v1056_v50 = vpop.permute.xlu2 %1055 }
 0xa95   : > { %v1063_v52 = vsel %vm357_vm11, %v1062_v49, %v1056_v50 }
 0xa96   : > { %v1065_v53 = vsel %vm1064_vm10, %v1063_v52, %v1060_v51  ;;  %v1582_v51 = vld [vmem:[%s2508_s1 + $0x700] ss:$0 sm:$0xff] }
 0xa97   : > { %v1090_v54 = vrot.slane %v1065_v53, 1 }
 0xa99   : > { %1535 = vmatmul.msk.f32.vlgmr.msrb.gmra.mxu2 %vm437_vm15, %v1090_v54  ;;  %v1333_v54 = vld [vmem:[%s2508_s1 + $0x720] sm:$0xff] }
 0xa9c   : > { %v1071_v56 = vpop.permute.xlu2 %1070 }
 0xaac   : > { %v1068_v55 = vpop.permute.xlu1 %1067 }
 0xaad   : > { %v1073_v57 = vsel %vm357_vm11, %v1062_v49, %v1068_v55 }
 0xaae   : > { %v1074_v19 = vsel %vm1064_vm10, %v1073_v57, %v1071_v56  ;;  %v1330_v57 = vld [vmem:[%s2508_s1 + $0x708] sm:$0xff] }
 0xaaf   : > { %v1126_v58 = vrot.slane %v1074_v19, 1  ;;  %v1332_v19 = vld [vmem:[%s2508_s1 + $0x718] sm:$0x3] }
 0xab1   : > { %1536 = vmatmul.msk.f32.vlgmr.msra.gmra.mxu0 %vm437_vm15, %v1126_v58  ;;  %v1334_v58 = vld [vmem:[%s2508_s1 + $0x728] sm:$0xff] }
 0xab4   : > { %v1221_v27 = vpop.permute.xlu1 %1220 }
 0xabc   : > { %v1253_v32 = vpop.permute.xlu1 %1252 }
 0xac4   : > { %v1231_v43 = vpop.permute.xlu1 %1230 }
 0xb1c   : > { %v1110_v61 = vpop.f32.mrf.mxu2 }
 0xb1d   : > { %v1111_v62 = vadd.f32 %v1581_v59, %v1110_v61  ;;  %v1335_v61 = vld [vmem:[%s2508_s1 + $0x730] sm:$0x3] }
 0xb1f   : > { %1540 = vmatpush.msk.msra.mxu3 %vm1159_vm9, %v1111_v62  ;;  %v1406_v62 = vld [vmem:[%s2508_s1 + $0x738] sm:$0xff] }
 0xb20   : > { %1541 = vmatmul.msk.f32.vlgmr.msra.gmra.mxu3 %vm184_vm3, %v1149_v0 }
 0xb21   : > { %1320 = vmatpush.msrb.mxu3 %v1302_v15 }
 0xb23   : > { %1321 = vmatpush.msrb.mxu3 %v1301_v16 }
 0xb25   : > { %1322 = vmatpush.msrb.mxu3 %v1300_v17 }
 0xb27   : > { %1323 = vmatpush.msrb.mxu3 %v1299_v39 }
 0xb28   : > { %1542 = vmatmul.msk.f32.gmra.mxu3 %vm184_vm3, %v1150_v1 }
 0xb29   : > { %1324 = vmatpush.msrb.mxu3 %v1298_v20 }
 0xb2b   : > { %1325 = vmatpush.msrb.mxu3 %v1297_v22 }
 0xb2e   : > { %v1146_v2 = vpop.f32.mrf.mxu0 }
 0xb2f   : > { %v1147_v3 = vadd.f32 %v1581_v59, %v1146_v2  ;;  %v1331_v59 = vld [vmem:[%s2508_s1 + $0x710] sm:$0xff] }
 0xb31   : > { %1537 = vmatpush.msk.msra.mxu1 %vm1159_vm9, %v1147_v3 }
 0xb32   : > { %1538 = vmatmul.msk.f32.vlgmr.msra.gmra.mxu1 %vm184_vm3, %v1151_v4 }
 0xb33   : > { %1287 = vmatpush.msrb.mxu1 %v1267_v18 }
 0xb35   : > { %1288 = vmatpush.msrb.mxu1 %v1266_v21 }
 0xb37   : > { %1289 = vmatpush.msrb.mxu1 %v1265_v23 }
 0xb39   : > { %1290 = vmatpush.msrb.mxu1 %v1264_v24 }
 0xb3a   : > { %1539 = vmatmul.msk.f32.gmra.mxu1 %vm184_vm3, %v1152_v5 }
 0xb3b   : > { %1291 = vmatpush.msrb.mxu1 %v1263_v25 }
 0xb3d   : > { %1292 = vmatpush.msrb.mxu1 %v1262_v26 }
 0xb3f   : > { %1436 = vmatpush.msra.mxu1 %v1406_v62 }
 0xba3   : > { %v1212_v6 = vpop.f32.mrf.mxu3 }
 0xbab   : > { %v1215_v8 = vpop.f32.mrf.mxu3 }
 0xbaf   : > { %v1180_v7 = vpop.f32.mrf.mxu1 }
 0xbb0   : > { %v1213_v9 = vadd.f32 %v1212_v6, %v1180_v7 }
 0xbb2   : > { %v1241_v42 = vrot.slane %v1213_v9, 1  ;;  %v1225_v14 = vrot.slane %v1213_v9, 7  ;;  %v1233_v30 = vsel %vm197_vm6, %v1213_v9, %v1219_v29 }
 0xbb7   : > { %v1183_v10 = vpop.f32.mrf.mxu1 }
 0xbb8   : > { %v1216_v11 = vadd.f32 %v1215_v8, %v1183_v10 }
 0xbba   : > { %v1242_v12 = vrot.slane %v1216_v11, 1  ;;  %v1234_v63 = vsel %vm197_vm6, %v1216_v11, %v1221_v27 }
 0xbbc   : > { %1246 = vrot.lane.b32.xlu0 %v1242_v12, %s1595_s28  ;;  %v1243_v13 = vsel %vm149_vm1, %v1241_v42, %v1242_v12 }
 0xbbd   : > { %1244 = vrot.lane.b32.xlu2 %v1243_v13, %s1595_s28  ;;  %v1583_v13 = vld [vmem:[%s2508_s1 + $0x740] ss:$0 sm:$0xff] }
 0xbc4   : > { %1226 = vrot.lane.b32.xlu0 %v1225_v14, %s1595_s28 }
 0xbc5   : > { %1254 = vrot.lane.b32.xlu2 %v1250_v31, %s1602_s7 }
 0xc17   : > { %v1245_v28 = vpop.permute.xlu2 %1244 }
 0xc18   : > { %v1258_v31 = vsel %vm282_vm8, %v1233_v30, %v1245_v28 }
 0xc19   : > { %v1260_v60 = vsel %vm1237_vm12, %v1258_v31, %v1253_v32 }
 0xc1a   : > { %v1305_v35 = vrot.slane %v1260_v60, 1 }
 0xc1f   : > { %v1255_v38 = vpop.permute.xlu2 %1254 }
 0xc2e   : > { %v1247_v33 = vpop.permute.xlu0 %1246 }
 0xc2f   : > { %v1259_v37 = vsel %vm282_vm8, %v1234_v63, %v1247_v33 }
 0xc30   : > { %v1261_v34 = vsel %vm1237_vm12, %v1259_v37, %v1255_v38 }
 0xc31   : > { %v1306_v36 = vrot.slane %v1261_v34, 1 }
 0xc33   : > { %v1307_v40 = vsel %vm149_vm1, %v1305_v35, %v1306_v36 }
 0xc34   : > { %1544 = vmatmul.msk.f32.vlgmr.msrb.gmra.mxu3 %vm357_vm11, %v1307_v40 }
 0xc36   : > { %v1227_v41 = vpop.permute.xlu0 %1226 }
 0xc37   : > { %v1235_v44 = vsel %vm282_vm8, %v1233_v30, %v1227_v41  ;;  %v1236_v45 = vsel %vm282_vm8, %v1234_v63, %v1227_v41 }
 0xc38   : > { %v1238_v46 = vsel %vm1237_vm12, %v1235_v44, %v1231_v43  ;;  %v1239_v47 = vsel %vm1237_vm12, %v1236_v45, %v1231_v43 }
 0xc39   : > { %v1272_v48 = vrot.slane %v1238_v46, 1  ;;  %v1273_v49 = vrot.slane %v1239_v47, 1 }
 0xc3b   : > { %v1274_v50 = vsel %vm149_vm1, %v1272_v48, %v1273_v49 }
 0xc3c   : > { %1543 = vmatmul.msk.f32.vlgmr.msrb.gmra.mxu1 %vm357_vm11, %v1274_v50 }
 0xcb7   : > { %v1327_v52 = vpop.f32.mrf.mxu3 }
 0xcb8   : > { %v1328_v53 = vadd.f32 %v1582_v51, %v1327_v52 }
 0xcb9   : > { %v1294_v55 = vpop.f32.mrf.mxu1 }
 0xcba   : > { %v1295_v56 = vadd.f32 %v1582_v51, %v1294_v55  ;;  %1360 = vmatpush.msra.mxu2 %v1328_v53 }
 0xcbb   : > { %1545 = vmatmul.msk.f32.vlgmr.msra.gmra.mxu2 %vm187_vm4, %v1333_v54 }
 0xcbc   : > { %1395 = vmatpush.msrb.mxu0 %v1295_v56  ;;  %1556 = vmatpush.msra.mxu3 %v1295_v56 }
 0xcbd   : > { %1548 = vmatmul.msk.f32.vlgmr.msrb.gmra.mxu0 %vm187_vm4, %v1330_v57  ;;  %1550 = vmatmul.msk.f32.vlgmr.msra.gmra.mxu3 %vm187_vm4, %v1332_v19 }
 0xcc3   : > { %1546 = vmatmul.msk.f32.gmra.mxu2 %vm187_vm4, %v1334_v58 }
 0xcc5   : > { %1549 = vmatmul.msk.f32.gmra.mxu0 %vm187_vm4, %v1331_v59 }
 0xccb   : > { %1547 = vmatmul.msk.f32.gmra.mxu2 %vm187_vm4, %v1335_v61 }
 0xd3a   : > { %v1397_v0 = vpop.f32.mrf.mxu0 }
 0xd3e   : > { %v1362_v1 = vpop.f32.mrf.mxu2 }
 0xd3f   : > { %v1398_v3 = vadd.f32 %v1397_v0, %v1362_v1 }
 0xd40   : > { %v1403_v9 = vpop.f32.mrf.mxu3 }
 0xd41   : > { %v1412_v6 = vrot.slane %v1398_v3, 1 }
 0xd42   : > { %v1400_v2 = vpop.f32.mrf.mxu0 }
 0xd46   : > { %v1365_v4 = vpop.f32.mrf.mxu2 }
 0xd47   : > { %v1401_v5 = vadd.f32 %v1400_v2, %v1365_v4 }
 0xd49   : > { %v1413_v7 = vrot.slane %v1401_v5, 1 }
 0xd4b   : > { %v1414_v8 = vsel %vm149_vm1, %v1412_v6, %v1413_v7 }
 0xd4c   : > { %1551 = vmatmul.msk.f32.vlgmr.msra.gmra.mxu1 %vm187_vm4, %v1414_v8 }
 0xd4e   : > { %v1368_v10 = vpop.f32.mrf.mxu2 }
 0xd4f   : > { %v1404_v11 = vadd.f32 %v1403_v9, %v1368_v10 }
 0xd51   : > { %v1415_v42 = vrot.slane %v1404_v11, 1 }
 0xd53   : > { %v1416_v12 = vsel %vm149_vm1, %v1413_v7, %v1415_v42 }
 0xd54   : > { %1552 = vmatmul.msk.f32.gmra.mxu1 %vm187_vm4, %v1416_v12 }
 0xdc9   : > { %v1438_v14 = vpop.f32.mrf.mxu1 }
 0xdca   : > { %v1439_v15 = vadd.f32 %v1583_v13, %v1438_v14 }
 0xdcc   : > { %1444 = vst.msk [vmem:[%s143_s15] sm:$0xff] %vm184_vm3, %v1439_v15 }
 0xdd1   : > { %v1441_v16 = vpop.f32.mrf.mxu1 }
 0xdd2   : > { %v1442_v17 = vadd.f32 %v1583_v13, %v1441_v16 }
 0xdd4   : > { %1445 = vst.msk [vmem:[%s143_s15 + $0x8] sm:$0xff] %vm184_vm3, %v1442_v17 }
 0xdd5 PF: > { %s12_s9 = sadd.s32 1, %s1590_s9  }
 0xdd6   : > { %p9_p4 = scmp.ge.s32.totalorder %s12_s9, 4  }
 0xdd8   :  { %11 = sbr.rel (!%p9_p4) target bundleno = 1 (0x1), region = 58 }

</bundles_post_ra>
